<compile_context>
chip_gen: v6e
topology: v6e:2x2x1
jax: 0.10.0
libtpu: 0.0.40
codegen_flags: <defaults>
</compile_context>

<pallas_src>
import functools

import numpy as np
import jax
import jax.numpy as jnp
from jax import lax
from jax.experimental import pallas as pl
from jax.experimental.pallas import tpu as pltpu


# ------------------------------ Fused kernel -------------------------------

def gat_forward_kernel(feat_ref, adj_ref, pool_ref,
                       w1_ref, al1_ref, ar1_ref, b1_ref,
                       w2_ref, al2_ref, ar2_ref, b2_ref,
                       wc_ref, bc_ref, o_ref,
                       *, num_heads, out_feats):
    """Single-invocation fused forward.

    feat_ref: [N, Fin]        node features
    adj_ref:  [N, N]          dense adjacency, adj[dst, src] (incl. self-loops)
    pool_ref: [B, N]          mean_nodes pooling matrix (1/|V_b| entries)
    wX_ref:   [K, H*D]        fc weight, already transposed
    alX/arX:  [H, H*D]        block-structured attn vectors
                              (row h holds attn[h] in cols h*D:(h+1)*D)
    bX_ref:   [1, H*D]        GATConv bias, flattened head-major
    wc_ref:   [H*D, C], bc_ref: [1, C]   classifier
    o_ref:    [B, C]
    """
    adj = adj_ref[...]
    mask = adj > 0.0
    neg_inf = jnp.float32(-1e30)
    bt_dims = (((1,), (1,)), ((), ()))      # contract last dims: A @ B^T

    def gat_layer(x, w_t, al_rows, ar_rows, bias_row):
        # fc projection (no bias) on MXU
        z = jnp.dot(x, w_t, preferred_element_type=jnp.float32)     # [N, H*D]
        # attention logits on MXU: elT[h, s], er[d, h]
        elT = lax.dot_general(al_rows, z, bt_dims,
                              preferred_element_type=jnp.float32)   # [H, N]
        er = lax.dot_general(z, ar_rows, bt_dims,
                             preferred_element_type=jnp.float32)    # [N, H]
        outs = []
        for h in range(num_heads):                     # static, fully unrolled
            # e[d, s] = el[s, h] + er[d, h]  (broadcast column + row)
            e = er[:, h:h + 1] + elT[h:h + 1, :]                    # [N, N]
            e = jnp.where(e > 0.0, e, 0.2 * e)                      # leaky_relu
            e = jnp.where(mask, e, neg_inf)                         # edges only
            e_max = jnp.max(e, axis=-1, keepdims=True)
            p = jnp.where(mask, jnp.exp(e - e_max), 0.0)
            denom = jnp.maximum(jnp.sum(p, axis=-1, keepdims=True), 1e-30)
            alpha = p / denom                                       # [N, N]
            z_h = z[:, h * out_feats:(h + 1) * out_feats]           # [N, D]
            outs.append(jnp.dot(alpha, z_h,
                                preferred_element_type=jnp.float32))
        # concat heads lane-dense -> [N, H*D], add flattened bias once
        return jnp.concatenate(outs, axis=-1) + bias_row

    # conv1 + relu
    h1 = gat_layer(feat_ref[...], w1_ref[...], al1_ref[...], ar1_ref[...],
                   b1_ref[...])
    h1 = jnp.maximum(h1, 0.0)
    # conv2
    h2 = gat_layer(h1, w2_ref[...], al2_ref[...], ar2_ref[...], b2_ref[...])
    # dgl.mean_nodes as pooling matmul, then classifier
    hg = jnp.dot(pool_ref[...], h2, preferred_element_type=jnp.float32)
    o_ref[...] = (jnp.dot(hg, wc_ref[...], preferred_element_type=jnp.float32)
                  + bc_ref[...])


def gat_model_forward(feat, adj, pool, params):
    num_heads = params["num_heads"]
    hidden_dim = params["hidden_dim"]
    B = pool.shape[0]
    C = params["wc_t"].shape[1]

    kernel = functools.partial(gat_forward_kernel,
                               num_heads=num_heads, out_feats=hidden_dim)
    vmem_spec = pl.BlockSpec(memory_space=pltpu.MemorySpace.VMEM)
    return pl.pallas_call(
        kernel,
        out_shape=jax.ShapeDtypeStruct((B, C), jnp.float32),
        in_specs=[vmem_spec] * 13,
        out_specs=vmem_spec,
    )(feat, adj, pool,
      params["w1_t"], params["al1_rows"], params["ar1_rows"], params["b1_flat"],
      params["w2_t"], params["al2_rows"], params["ar2_rows"], params["b2_flat"],
      params["wc_t"], params["bc"])


# ------------------------------ Param helpers -------------------------------

def block_rows(a):
    """[H, D] attn vector -> [H, H*D]; row h holds a[h] in cols h*D:(h+1)*D."""
    H, D = a.shape
    eye = jnp.eye(H, dtype=a.dtype)
    return (eye[:, :, None] * a[None, :, :]).reshape(H, H * D)


# --------------------------------- Driver -----------------------------------

if __name__ == "__main__":
    num_heads = 8
    input_dim = 16
    hidden_dim = 8
    num_classes = 4
    B = 2                   # graphs in the batched graph
    nodes_per_graph = 8
    N = B * nodes_per_graph
    HD = num_heads * hidden_dim

    key = jax.random.PRNGKey(0)
    ks = jax.random.split(key, 8)

    def glorot(k, shape):
        fan_out, fan_in = shape[0], shape[-1]
        lim = (6.0 / (fan_in + fan_out)) ** 0.5
        return jax.random.uniform(k, shape, jnp.float32, -lim, lim)

    # conv1 params (GATConv(input_dim, hidden_dim, 8))
    w1 = glorot(ks[0], (HD, input_dim))             # fc weight [out, in]
    al1 = glorot(ks[1], (num_heads, hidden_dim))
    ar1 = glorot(ks[2], (num_heads, hidden_dim))
    b1 = jnp.zeros((num_heads, hidden_dim), jnp.float32)
    # conv2 params (GATConv(hidden_dim*8, hidden_dim, 8))
    w2 = glorot(ks[3], (HD, HD))
    al2 = glorot(ks[4], (num_heads, hidden_dim))
    ar2 = glorot(ks[5], (num_heads, hidden_dim))
    b2 = jnp.zeros((num_heads, hidden_dim), jnp.float32)
    # classifier
    wc = glorot(ks[6], (num_classes, HD))
    bc = jnp.zeros((1, num_classes), jnp.float32)

    # node features
    feat = jax.random.normal(ks[7], (N, input_dim), jnp.float32)

    # batched graph: per-graph undirected ring + self-loops; adj[dst, src]
    adj_np = np.zeros((N, N), np.float32)
    for b in range(B):
        off = b * nodes_per_graph
        for i in range(nodes_per_graph):
            s = off + i
            d = off + (i + 1) % nodes_per_graph
            adj_np[d, s] = 1.0
            adj_np[s, d] = 1.0
            adj_np[s, s] = 1.0
    adj = jnp.asarray(adj_np)

    # dgl.mean_nodes pooling matrix
    pool_np = np.zeros((B, N), np.float32)
    for b in range(B):
        pool_np[b, b * nodes_per_graph:(b + 1) * nodes_per_graph] = (
            1.0 / nodes_per_graph)
    pool = jnp.asarray(pool_np)

    params = dict(
        num_heads=num_heads, hidden_dim=hidden_dim,
        w1_t=w1.T, al1_rows=block_rows(al1), ar1_rows=block_rows(ar1),
        b1_flat=b1.reshape(1, HD),
        w2_t=w2.T, al2_rows=block_rows(al2), ar2_rows=block_rows(ar2),
        b2_flat=b2.reshape(1, HD),
        wc_t=wc.T, bc=bc,
    )

    out = gat_model_forward(feat, adj, pool, params)
    out = jax.block_until_ready(out)
    assert out.shape == (B, num_classes)
    assert out.dtype == jnp.float32
    assert bool(jnp.all(jnp.isfinite(out)))
    print("KERNEL_OK")
</pallas_src>

<mosaic_0001>
module attributes {stable_mosaic.version = 11 : i64} {
  func.func @gat_forward_kernel(%arg0: memref<16x16xf32, #tpu.memory_space<vmem>>, %arg1: memref<16x16xf32, #tpu.memory_space<vmem>>, %arg2: memref<2x16xf32, #tpu.memory_space<vmem>>, %arg3: memref<16x64xf32, #tpu.memory_space<vmem>>, %arg4: memref<8x64xf32, #tpu.memory_space<vmem>>, %arg5: memref<8x64xf32, #tpu.memory_space<vmem>>, %arg6: memref<1x64xf32, #tpu.memory_space<vmem>>, %arg7: memref<64x64xf32, #tpu.memory_space<vmem>>, %arg8: memref<8x64xf32, #tpu.memory_space<vmem>>, %arg9: memref<8x64xf32, #tpu.memory_space<vmem>>, %arg10: memref<1x64xf32, #tpu.memory_space<vmem>>, %arg11: memref<64x4xf32, #tpu.memory_space<vmem>>, %arg12: memref<1x4xf32, #tpu.memory_space<vmem>>, %arg13: memref<2x4xf32, #tpu.memory_space<vmem>>) attributes {dimension_semantics = [], scalar_prefetch = 0 : i64, scratch_operands = 0 : i64, tpu.core_type = #tpu.core_type<tc>} {
    %c0 = arith.constant 0 : index
    %c0_0 = arith.constant 0 : index
    %0 = vector.load %arg1[%c0, %c0_0] : memref<16x16xf32, #tpu.memory_space<vmem>>, vector<16x16xf32>
    %cst = arith.constant 0.000000e+00 : f32
    %1 = vector.broadcast %cst : f32 to vector<16x16xf32>
    %2 = arith.cmpf ogt, %0, %1 : vector<16x16xf32>
    %c0_1 = arith.constant 0 : index
    %c0_2 = arith.constant 0 : index
    %3 = vector.load %arg0[%c0_1, %c0_2] : memref<16x16xf32, #tpu.memory_space<vmem>>, vector<16x16xf32>
    %c0_3 = arith.constant 0 : index
    %c0_4 = arith.constant 0 : index
    %4 = vector.load %arg3[%c0_3, %c0_4] : memref<16x64xf32, #tpu.memory_space<vmem>>, vector<16x64xf32>
    %c0_5 = arith.constant 0 : index
    %c0_6 = arith.constant 0 : index
    %5 = vector.load %arg4[%c0_5, %c0_6] : memref<8x64xf32, #tpu.memory_space<vmem>>, vector<8x64xf32>
    %c0_7 = arith.constant 0 : index
    %c0_8 = arith.constant 0 : index
    %6 = vector.load %arg5[%c0_7, %c0_8] : memref<8x64xf32, #tpu.memory_space<vmem>>, vector<8x64xf32>
    %c0_9 = arith.constant 0 : index
    %c0_10 = arith.constant 0 : index
    %7 = vector.load %arg6[%c0_9, %c0_10] : memref<1x64xf32, #tpu.memory_space<vmem>>, vector<1x64xf32>
    %cst_11 = arith.constant dense<0.000000e+00> : vector<16x64xf32>
    %8 = tpu.matmul %3, %4, %cst_11 {dimension_numbers = #tpu.dot_dimension_numbers<[1], [0], [0], [1], [0, 0, 1, 1], [], []>} : vector<16x16xf32>, vector<16x64xf32>, vector<16x64xf32> -> vector<16x64xf32>
    %cst_12 = arith.constant dense<0.000000e+00> : vector<8x16xf32>
    %9 = tpu.matmul %5, %8, %cst_12 {dimension_numbers = #tpu.dot_dimension_numbers<[1], [1], [0], [0], [0, 0, 1, 0], [], []>} : vector<8x64xf32>, vector<16x64xf32>, vector<8x16xf32> -> vector<8x16xf32>
    %cst_13 = arith.constant dense<0.000000e+00> : vector<16x8xf32>
    %10 = tpu.matmul %8, %6, %cst_13 {dimension_numbers = #tpu.dot_dimension_numbers<[1], [1], [0], [0], [0, 0, 1, 0], [], []>} : vector<16x64xf32>, vector<8x64xf32>, vector<16x8xf32> -> vector<16x8xf32>
    %11 = vector.extract_strided_slice %10 {offsets = [0, 0], sizes = [16, 1], strides = [1, 1]} : vector<16x8xf32> to vector<16x1xf32>
    %12 = vector.extract_strided_slice %9 {offsets = [0, 0], sizes = [1, 16], strides = [1, 1]} : vector<8x16xf32> to vector<1x16xf32>
    %13 = vector.broadcast %11 : vector<16x1xf32> to vector<16x16xf32>
    %14 = vector.broadcast %12 : vector<1x16xf32> to vector<16x16xf32>
    %15 = arith.addf %13, %14 : vector<16x16xf32>
    %cst_14 = arith.constant 0.000000e+00 : f32
    %16 = vector.broadcast %cst_14 : f32 to vector<16x16xf32>
    %17 = arith.cmpf ogt, %15, %16 : vector<16x16xf32>
    %cst_15 = arith.constant 2.000000e-01 : f32
    %18 = vector.broadcast %cst_15 : f32 to vector<16x16xf32>
    %19 = arith.mulf %18, %15 : vector<16x16xf32>
    %20 = arith.select %17, %15, %19 : vector<16x16xi1>, vector<16x16xf32>
    %cst_16 = arith.constant -1.000000e+30 : f32
    %21 = vector.broadcast %cst_16 : f32 to vector<16x16xf32>
    %22 = arith.select %2, %20, %21 : vector<16x16xi1>, vector<16x16xf32>
    %cst_17 = arith.constant dense<0xFF800000> : vector<16xf32>
    %23 = vector.multi_reduction <maximumf>, %22, %cst_17 [1] : vector<16x16xf32> to vector<16xf32>
    %24 = vector.shape_cast %23 : vector<16xf32> to vector<16x1xf32>
    %25 = vector.broadcast %24 : vector<16x1xf32> to vector<16x16xf32>
    %26 = arith.subf %22, %25 : vector<16x16xf32>
    %27 = math.exp %26 : vector<16x16xf32>
    %cst_18 = arith.constant 0.000000e+00 : f32
    %28 = vector.broadcast %cst_18 : f32 to vector<16x16xf32>
    %29 = arith.select %2, %27, %28 : vector<16x16xi1>, vector<16x16xf32>
    %cst_19 = arith.constant dense<0.000000e+00> : vector<16xf32>
    %30 = vector.multi_reduction <add>, %29, %cst_19 [1] : vector<16x16xf32> to vector<16xf32>
    %31 = vector.shape_cast %30 : vector<16xf32> to vector<16x1xf32>
    %cst_20 = arith.constant 1.000000e-30 : f32
    %32 = vector.broadcast %cst_20 : f32 to vector<16x1xf32>
    %33 = arith.maximumf %31, %32 : vector<16x1xf32>
    %34 = vector.broadcast %33 : vector<16x1xf32> to vector<16x16xf32>
    %35 = arith.divf %29, %34 : vector<16x16xf32>
    %36 = vector.extract_strided_slice %8 {offsets = [0, 0], sizes = [16, 8], strides = [1, 1]} : vector<16x64xf32> to vector<16x8xf32>
    %cst_21 = arith.constant dense<0.000000e+00> : vector<16x8xf32>
    %37 = tpu.matmul %35, %36, %cst_21 {dimension_numbers = #tpu.dot_dimension_numbers<[1], [0], [0], [1], [0, 0, 1, 1], [], []>} : vector<16x16xf32>, vector<16x8xf32>, vector<16x8xf32> -> vector<16x8xf32>
    %38 = vector.extract_strided_slice %10 {offsets = [0, 1], sizes = [16, 1], strides = [1, 1]} : vector<16x8xf32> to vector<16x1xf32>
    %39 = vector.extract_strided_slice %9 {offsets = [1, 0], sizes = [1, 16], strides = [1, 1]} : vector<8x16xf32> to vector<1x16xf32>
    %40 = vector.broadcast %38 : vector<16x1xf32> to vector<16x16xf32>
    %41 = vector.broadcast %39 : vector<1x16xf32> to vector<16x16xf32>
    %42 = arith.addf %40, %41 : vector<16x16xf32>
    %cst_22 = arith.constant 0.000000e+00 : f32
    %43 = vector.broadcast %cst_22 : f32 to vector<16x16xf32>
    %44 = arith.cmpf ogt, %42, %43 : vector<16x16xf32>
    %cst_23 = arith.constant 2.000000e-01 : f32
    %45 = vector.broadcast %cst_23 : f32 to vector<16x16xf32>
    %46 = arith.mulf %45, %42 : vector<16x16xf32>
    %47 = arith.select %44, %42, %46 : vector<16x16xi1>, vector<16x16xf32>
    %cst_24 = arith.constant -1.000000e+30 : f32
    %48 = vector.broadcast %cst_24 : f32 to vector<16x16xf32>
    %49 = arith.select %2, %47, %48 : vector<16x16xi1>, vector<16x16xf32>
    %cst_25 = arith.constant dense<0xFF800000> : vector<16xf32>
    %50 = vector.multi_reduction <maximumf>, %49, %cst_25 [1] : vector<16x16xf32> to vector<16xf32>
    %51 = vector.shape_cast %50 : vector<16xf32> to vector<16x1xf32>
    %52 = vector.broadcast %51 : vector<16x1xf32> to vector<16x16xf32>
    %53 = arith.subf %49, %52 : vector<16x16xf32>
    %54 = math.exp %53 : vector<16x16xf32>
    %cst_26 = arith.constant 0.000000e+00 : f32
    %55 = vector.broadcast %cst_26 : f32 to vector<16x16xf32>
    %56 = arith.select %2, %54, %55 : vector<16x16xi1>, vector<16x16xf32>
    %cst_27 = arith.constant dense<0.000000e+00> : vector<16xf32>
    %57 = vector.multi_reduction <add>, %56, %cst_27 [1] : vector<16x16xf32> to vector<16xf32>
    %58 = vector.shape_cast %57 : vector<16xf32> to vector<16x1xf32>
    %cst_28 = arith.constant 1.000000e-30 : f32
    %59 = vector.broadcast %cst_28 : f32 to vector<16x1xf32>
    %60 = arith.maximumf %58, %59 : vector<16x1xf32>
    %61 = vector.broadcast %60 : vector<16x1xf32> to vector<16x16xf32>
    %62 = arith.divf %56, %61 : vector<16x16xf32>
    %63 = vector.extract_strided_slice %8 {offsets = [0, 8], sizes = [16, 8], strides = [1, 1]} : vector<16x64xf32> to vector<16x8xf32>
    %cst_29 = arith.constant dense<0.000000e+00> : vector<16x8xf32>
    %64 = tpu.matmul %62, %63, %cst_29 {dimension_numbers = #tpu.dot_dimension_numbers<[1], [0], [0], [1], [0, 0, 1, 1], [], []>} : vector<16x16xf32>, vector<16x8xf32>, vector<16x8xf32> -> vector<16x8xf32>
    %65 = vector.extract_strided_slice %10 {offsets = [0, 2], sizes = [16, 1], strides = [1, 1]} : vector<16x8xf32> to vector<16x1xf32>
    %66 = vector.extract_strided_slice %9 {offsets = [2, 0], sizes = [1, 16], strides = [1, 1]} : vector<8x16xf32> to vector<1x16xf32>
    %67 = vector.broadcast %65 : vector<16x1xf32> to vector<16x16xf32>
    %68 = vector.broadcast %66 : vector<1x16xf32> to vector<16x16xf32>
    %69 = arith.addf %67, %68 : vector<16x16xf32>
    %cst_30 = arith.constant 0.000000e+00 : f32
    %70 = vector.broadcast %cst_30 : f32 to vector<16x16xf32>
    %71 = arith.cmpf ogt, %69, %70 : vector<16x16xf32>
    %cst_31 = arith.constant 2.000000e-01 : f32
    %72 = vector.broadcast %cst_31 : f32 to vector<16x16xf32>
    %73 = arith.mulf %72, %69 : vector<16x16xf32>
    %74 = arith.select %71, %69, %73 : vector<16x16xi1>, vector<16x16xf32>
    %cst_32 = arith.constant -1.000000e+30 : f32
    %75 = vector.broadcast %cst_32 : f32 to vector<16x16xf32>
    %76 = arith.select %2, %74, %75 : vector<16x16xi1>, vector<16x16xf32>
    %cst_33 = arith.constant dense<0xFF800000> : vector<16xf32>
    %77 = vector.multi_reduction <maximumf>, %76, %cst_33 [1] : vector<16x16xf32> to vector<16xf32>
    %78 = vector.shape_cast %77 : vector<16xf32> to vector<16x1xf32>
    %79 = vector.broadcast %78 : vector<16x1xf32> to vector<16x16xf32>
    %80 = arith.subf %76, %79 : vector<16x16xf32>
    %81 = math.exp %80 : vector<16x16xf32>
    %cst_34 = arith.constant 0.000000e+00 : f32
    %82 = vector.broadcast %cst_34 : f32 to vector<16x16xf32>
    %83 = arith.select %2, %81, %82 : vector<16x16xi1>, vector<16x16xf32>
    %cst_35 = arith.constant dense<0.000000e+00> : vector<16xf32>
    %84 = vector.multi_reduction <add>, %83, %cst_35 [1] : vector<16x16xf32> to vector<16xf32>
    %85 = vector.shape_cast %84 : vector<16xf32> to vector<16x1xf32>
    %cst_36 = arith.constant 1.000000e-30 : f32
    %86 = vector.broadcast %cst_36 : f32 to vector<16x1xf32>
    %87 = arith.maximumf %85, %86 : vector<16x1xf32>
    %88 = vector.broadcast %87 : vector<16x1xf32> to vector<16x16xf32>
    %89 = arith.divf %83, %88 : vector<16x16xf32>
    %90 = vector.extract_strided_slice %8 {offsets = [0, 16], sizes = [16, 8], strides = [1, 1]} : vector<16x64xf32> to vector<16x8xf32>
    %cst_37 = arith.constant dense<0.000000e+00> : vector<16x8xf32>
    %91 = tpu.matmul %89, %90, %cst_37 {dimension_numbers = #tpu.dot_dimension_numbers<[1], [0], [0], [1], [0, 0, 1, 1], [], []>} : vector<16x16xf32>, vector<16x8xf32>, vector<16x8xf32> -> vector<16x8xf32>
    %92 = vector.extract_strided_slice %10 {offsets = [0, 3], sizes = [16, 1], strides = [1, 1]} : vector<16x8xf32> to vector<16x1xf32>
    %93 = vector.extract_strided_slice %9 {offsets = [3, 0], sizes = [1, 16], strides = [1, 1]} : vector<8x16xf32> to vector<1x16xf32>
    %94 = vector.broadcast %92 : vector<16x1xf32> to vector<16x16xf32>
    %95 = vector.broadcast %93 : vector<1x16xf32> to vector<16x16xf32>
    %96 = arith.addf %94, %95 : vector<16x16xf32>
    %cst_38 = arith.constant 0.000000e+00 : f32
    %97 = vector.broadcast %cst_38 : f32 to vector<16x16xf32>
    %98 = arith.cmpf ogt, %96, %97 : vector<16x16xf32>
    %cst_39 = arith.constant 2.000000e-01 : f32
    %99 = vector.broadcast %cst_39 : f32 to vector<16x16xf32>
    %100 = arith.mulf %99, %96 : vector<16x16xf32>
    %101 = arith.select %98, %96, %100 : vector<16x16xi1>, vector<16x16xf32>
    %cst_40 = arith.constant -1.000000e+30 : f32
    %102 = vector.broadcast %cst_40 : f32 to vector<16x16xf32>
    %103 = arith.select %2, %101, %102 : vector<16x16xi1>, vector<16x16xf32>
    %cst_41 = arith.constant dense<0xFF800000> : vector<16xf32>
    %104 = vector.multi_reduction <maximumf>, %103, %cst_41 [1] : vector<16x16xf32> to vector<16xf32>
    %105 = vector.shape_cast %104 : vector<16xf32> to vector<16x1xf32>
    %106 = vector.broadcast %105 : vector<16x1xf32> to vector<16x16xf32>
    %107 = arith.subf %103, %106 : vector<16x16xf32>
    %108 = math.exp %107 : vector<16x16xf32>
    %cst_42 = arith.constant 0.000000e+00 : f32
    %109 = vector.broadcast %cst_42 : f32 to vector<16x16xf32>
    %110 = arith.select %2, %108, %109 : vector<16x16xi1>, vector<16x16xf32>
    %cst_43 = arith.constant dense<0.000000e+00> : vector<16xf32>
    %111 = vector.multi_reduction <add>, %110, %cst_43 [1] : vector<16x16xf32> to vector<16xf32>
    %112 = vector.shape_cast %111 : vector<16xf32> to vector<16x1xf32>
    %cst_44 = arith.constant 1.000000e-30 : f32
    %113 = vector.broadcast %cst_44 : f32 to vector<16x1xf32>
    %114 = arith.maximumf %112, %113 : vector<16x1xf32>
    %115 = vector.broadcast %114 : vector<16x1xf32> to vector<16x16xf32>
    %116 = arith.divf %110, %115 : vector<16x16xf32>
    %117 = vector.extract_strided_slice %8 {offsets = [0, 24], sizes = [16, 8], strides = [1, 1]} : vector<16x64xf32> to vector<16x8xf32>
    %cst_45 = arith.constant dense<0.000000e+00> : vector<16x8xf32>
    %118 = tpu.matmul %116, %117, %cst_45 {dimension_numbers = #tpu.dot_dimension_numbers<[1], [0], [0], [1], [0, 0, 1, 1], [], []>} : vector<16x16xf32>, vector<16x8xf32>, vector<16x8xf32> -> vector<16x8xf32>
    %119 = vector.extract_strided_slice %10 {offsets = [0, 4], sizes = [16, 1], strides = [1, 1]} : vector<16x8xf32> to vector<16x1xf32>
    %120 = vector.extract_strided_slice %9 {offsets = [4, 0], sizes = [1, 16], strides = [1, 1]} : vector<8x16xf32> to vector<1x16xf32>
    %121 = vector.broadcast %119 : vector<16x1xf32> to vector<16x16xf32>
    %122 = vector.broadcast %120 : vector<1x16xf32> to vector<16x16xf32>
    %123 = arith.addf %121, %122 : vector<16x16xf32>
    %cst_46 = arith.constant 0.000000e+00 : f32
    %124 = vector.broadcast %cst_46 : f32 to vector<16x16xf32>
    %125 = arith.cmpf ogt, %123, %124 : vector<16x16xf32>
    %cst_47 = arith.constant 2.000000e-01 : f32
    %126 = vector.broadcast %cst_47 : f32 to vector<16x16xf32>
    %127 = arith.mulf %126, %123 : vector<16x16xf32>
    %128 = arith.select %125, %123, %127 : vector<16x16xi1>, vector<16x16xf32>
    %cst_48 = arith.constant -1.000000e+30 : f32
    %129 = vector.broadcast %cst_48 : f32 to vector<16x16xf32>
    %130 = arith.select %2, %128, %129 : vector<16x16xi1>, vector<16x16xf32>
    %cst_49 = arith.constant dense<0xFF800000> : vector<16xf32>
    %131 = vector.multi_reduction <maximumf>, %130, %cst_49 [1] : vector<16x16xf32> to vector<16xf32>
    %132 = vector.shape_cast %131 : vector<16xf32> to vector<16x1xf32>
    %133 = vector.broadcast %132 : vector<16x1xf32> to vector<16x16xf32>
    %134 = arith.subf %130, %133 : vector<16x16xf32>
    %135 = math.exp %134 : vector<16x16xf32>
    %cst_50 = arith.constant 0.000000e+00 : f32
    %136 = vector.broadcast %cst_50 : f32 to vector<16x16xf32>
    %137 = arith.select %2, %135, %136 : vector<16x16xi1>, vector<16x16xf32>
    %cst_51 = arith.constant dense<0.000000e+00> : vector<16xf32>
    %138 = vector.multi_reduction <add>, %137, %cst_51 [1] : vector<16x16xf32> to vector<16xf32>
    %139 = vector.shape_cast %138 : vector<16xf32> to vector<16x1xf32>
    %cst_52 = arith.constant 1.000000e-30 : f32
    %140 = vector.broadcast %cst_52 : f32 to vector<16x1xf32>
    %141 = arith.maximumf %139, %140 : vector<16x1xf32>
    %142 = vector.broadcast %141 : vector<16x1xf32> to vector<16x16xf32>
    %143 = arith.divf %137, %142 : vector<16x16xf32>
    %144 = vector.extract_strided_slice %8 {offsets = [0, 32], sizes = [16, 8], strides = [1, 1]} : vector<16x64xf32> to vector<16x8xf32>
    %cst_53 = arith.constant dense<0.000000e+00> : vector<16x8xf32>
    %145 = tpu.matmul %143, %144, %cst_53 {dimension_numbers = #tpu.dot_dimension_numbers<[1], [0], [0], [1], [0, 0, 1, 1], [], []>} : vector<16x16xf32>, vector<16x8xf32>, vector<16x8xf32> -> vector<16x8xf32>
    %146 = vector.extract_strided_slice %10 {offsets = [0, 5], sizes = [16, 1], strides = [1, 1]} : vector<16x8xf32> to vector<16x1xf32>
    %147 = vector.extract_strided_slice %9 {offsets = [5, 0], sizes = [1, 16], strides = [1, 1]} : vector<8x16xf32> to vector<1x16xf32>
    %148 = vector.broadcast %146 : vector<16x1xf32> to vector<16x16xf32>
    %149 = vector.broadcast %147 : vector<1x16xf32> to vector<16x16xf32>
    %150 = arith.addf %148, %149 : vector<16x16xf32>
    %cst_54 = arith.constant 0.000000e+00 : f32
    %151 = vector.broadcast %cst_54 : f32 to vector<16x16xf32>
    %152 = arith.cmpf ogt, %150, %151 : vector<16x16xf32>
    %cst_55 = arith.constant 2.000000e-01 : f32
    %153 = vector.broadcast %cst_55 : f32 to vector<16x16xf32>
    %154 = arith.mulf %153, %150 : vector<16x16xf32>
    %155 = arith.select %152, %150, %154 : vector<16x16xi1>, vector<16x16xf32>
    %cst_56 = arith.constant -1.000000e+30 : f32
    %156 = vector.broadcast %cst_56 : f32 to vector<16x16xf32>
    %157 = arith.select %2, %155, %156 : vector<16x16xi1>, vector<16x16xf32>
    %cst_57 = arith.constant dense<0xFF800000> : vector<16xf32>
    %158 = vector.multi_reduction <maximumf>, %157, %cst_57 [1] : vector<16x16xf32> to vector<16xf32>
    %159 = vector.shape_cast %158 : vector<16xf32> to vector<16x1xf32>
    %160 = vector.broadcast %159 : vector<16x1xf32> to vector<16x16xf32>
    %161 = arith.subf %157, %160 : vector<16x16xf32>
    %162 = math.exp %161 : vector<16x16xf32>
    %cst_58 = arith.constant 0.000000e+00 : f32
    %163 = vector.broadcast %cst_58 : f32 to vector<16x16xf32>
    %164 = arith.select %2, %162, %163 : vector<16x16xi1>, vector<16x16xf32>
    %cst_59 = arith.constant dense<0.000000e+00> : vector<16xf32>
    %165 = vector.multi_reduction <add>, %164, %cst_59 [1] : vector<16x16xf32> to vector<16xf32>
    %166 = vector.shape_cast %165 : vector<16xf32> to vector<16x1xf32>
    %cst_60 = arith.constant 1.000000e-30 : f32
    %167 = vector.broadcast %cst_60 : f32 to vector<16x1xf32>
    %168 = arith.maximumf %166, %167 : vector<16x1xf32>
    %169 = vector.broadcast %168 : vector<16x1xf32> to vector<16x16xf32>
    %170 = arith.divf %164, %169 : vector<16x16xf32>
    %171 = vector.extract_strided_slice %8 {offsets = [0, 40], sizes = [16, 8], strides = [1, 1]} : vector<16x64xf32> to vector<16x8xf32>
    %cst_61 = arith.constant dense<0.000000e+00> : vector<16x8xf32>
    %172 = tpu.matmul %170, %171, %cst_61 {dimension_numbers = #tpu.dot_dimension_numbers<[1], [0], [0], [1], [0, 0, 1, 1], [], []>} : vector<16x16xf32>, vector<16x8xf32>, vector<16x8xf32> -> vector<16x8xf32>
    %173 = vector.extract_strided_slice %10 {offsets = [0, 6], sizes = [16, 1], strides = [1, 1]} : vector<16x8xf32> to vector<16x1xf32>
    %174 = vector.extract_strided_slice %9 {offsets = [6, 0], sizes = [1, 16], strides = [1, 1]} : vector<8x16xf32> to vector<1x16xf32>
    %175 = vector.broadcast %173 : vector<16x1xf32> to vector<16x16xf32>
    %176 = vector.broadcast %174 : vector<1x16xf32> to vector<16x16xf32>
    %177 = arith.addf %175, %176 : vector<16x16xf32>
    %cst_62 = arith.constant 0.000000e+00 : f32
    %178 = vector.broadcast %cst_62 : f32 to vector<16x16xf32>
    %179 = arith.cmpf ogt, %177, %178 : vector<16x16xf32>
    %cst_63 = arith.constant 2.000000e-01 : f32
    %180 = vector.broadcast %cst_63 : f32 to vector<16x16xf32>
    %181 = arith.mulf %180, %177 : vector<16x16xf32>
    %182 = arith.select %179, %177, %181 : vector<16x16xi1>, vector<16x16xf32>
    %cst_64 = arith.constant -1.000000e+30 : f32
    %183 = vector.broadcast %cst_64 : f32 to vector<16x16xf32>
    %184 = arith.select %2, %182, %183 : vector<16x16xi1>, vector<16x16xf32>
    %cst_65 = arith.constant dense<0xFF800000> : vector<16xf32>
    %185 = vector.multi_reduction <maximumf>, %184, %cst_65 [1] : vector<16x16xf32> to vector<16xf32>
    %186 = vector.shape_cast %185 : vector<16xf32> to vector<16x1xf32>
    %187 = vector.broadcast %186 : vector<16x1xf32> to vector<16x16xf32>
    %188 = arith.subf %184, %187 : vector<16x16xf32>
    %189 = math.exp %188 : vector<16x16xf32>
    %cst_66 = arith.constant 0.000000e+00 : f32
    %190 = vector.broadcast %cst_66 : f32 to vector<16x16xf32>
    %191 = arith.select %2, %189, %190 : vector<16x16xi1>, vector<16x16xf32>
    %cst_67 = arith.constant dense<0.000000e+00> : vector<16xf32>
    %192 = vector.multi_reduction <add>, %191, %cst_67 [1] : vector<16x16xf32> to vector<16xf32>
    %193 = vector.shape_cast %192 : vector<16xf32> to vector<16x1xf32>
    %cst_68 = arith.constant 1.000000e-30 : f32
    %194 = vector.broadcast %cst_68 : f32 to vector<16x1xf32>
    %195 = arith.maximumf %193, %194 : vector<16x1xf32>
    %196 = vector.broadcast %195 : vector<16x1xf32> to vector<16x16xf32>
    %197 = arith.divf %191, %196 : vector<16x16xf32>
    %198 = vector.extract_strided_slice %8 {offsets = [0, 48], sizes = [16, 8], strides = [1, 1]} : vector<16x64xf32> to vector<16x8xf32>
    %cst_69 = arith.constant dense<0.000000e+00> : vector<16x8xf32>
    %199 = tpu.matmul %197, %198, %cst_69 {dimension_numbers = #tpu.dot_dimension_numbers<[1], [0], [0], [1], [0, 0, 1, 1], [], []>} : vector<16x16xf32>, vector<16x8xf32>, vector<16x8xf32> -> vector<16x8xf32>
    %200 = vector.extract_strided_slice %10 {offsets = [0, 7], sizes = [16, 1], strides = [1, 1]} : vector<16x8xf32> to vector<16x1xf32>
    %201 = vector.extract_strided_slice %9 {offsets = [7, 0], sizes = [1, 16], strides = [1, 1]} : vector<8x16xf32> to vector<1x16xf32>
    %202 = vector.broadcast %200 : vector<16x1xf32> to vector<16x16xf32>
    %203 = vector.broadcast %201 : vector<1x16xf32> to vector<16x16xf32>
    %204 = arith.addf %202, %203 : vector<16x16xf32>
    %cst_70 = arith.constant 0.000000e+00 : f32
    %205 = vector.broadcast %cst_70 : f32 to vector<16x16xf32>
    %206 = arith.cmpf ogt, %204, %205 : vector<16x16xf32>
    %cst_71 = arith.constant 2.000000e-01 : f32
    %207 = vector.broadcast %cst_71 : f32 to vector<16x16xf32>
    %208 = arith.mulf %207, %204 : vector<16x16xf32>
    %209 = arith.select %206, %204, %208 : vector<16x16xi1>, vector<16x16xf32>
    %cst_72 = arith.constant -1.000000e+30 : f32
    %210 = vector.broadcast %cst_72 : f32 to vector<16x16xf32>
    %211 = arith.select %2, %209, %210 : vector<16x16xi1>, vector<16x16xf32>
    %cst_73 = arith.constant dense<0xFF800000> : vector<16xf32>
    %212 = vector.multi_reduction <maximumf>, %211, %cst_73 [1] : vector<16x16xf32> to vector<16xf32>
    %213 = vector.shape_cast %212 : vector<16xf32> to vector<16x1xf32>
    %214 = vector.broadcast %213 : vector<16x1xf32> to vector<16x16xf32>
    %215 = arith.subf %211, %214 : vector<16x16xf32>
    %216 = math.exp %215 : vector<16x16xf32>
    %cst_74 = arith.constant 0.000000e+00 : f32
    %217 = vector.broadcast %cst_74 : f32 to vector<16x16xf32>
    %218 = arith.select %2, %216, %217 : vector<16x16xi1>, vector<16x16xf32>
    %cst_75 = arith.constant dense<0.000000e+00> : vector<16xf32>
    %219 = vector.multi_reduction <add>, %218, %cst_75 [1] : vector<16x16xf32> to vector<16xf32>
    %220 = vector.shape_cast %219 : vector<16xf32> to vector<16x1xf32>
    %cst_76 = arith.constant 1.000000e-30 : f32
    %221 = vector.broadcast %cst_76 : f32 to vector<16x1xf32>
    %222 = arith.maximumf %220, %221 : vector<16x1xf32>
    %223 = vector.broadcast %222 : vector<16x1xf32> to vector<16x16xf32>
    %224 = arith.divf %218, %223 : vector<16x16xf32>
    %225 = vector.extract_strided_slice %8 {offsets = [0, 56], sizes = [16, 8], strides = [1, 1]} : vector<16x64xf32> to vector<16x8xf32>
    %cst_77 = arith.constant dense<0.000000e+00> : vector<16x8xf32>
    %226 = tpu.matmul %224, %225, %cst_77 {dimension_numbers = #tpu.dot_dimension_numbers<[1], [0], [0], [1], [0, 0, 1, 1], [], []>} : vector<16x16xf32>, vector<16x8xf32>, vector<16x8xf32> -> vector<16x8xf32>
    %227 = tpu.concatenate %37, %64, %91, %118, %145, %172, %199, %226 in 1 : vector<16x8xf32>, vector<16x8xf32>, vector<16x8xf32>, vector<16x8xf32>, vector<16x8xf32>, vector<16x8xf32>, vector<16x8xf32>, vector<16x8xf32> -> vector<16x64xf32>
    %228 = vector.broadcast %7 : vector<1x64xf32> to vector<16x64xf32>
    %229 = arith.addf %227, %228 : vector<16x64xf32>
    %cst_78 = arith.constant 0.000000e+00 : f32
    %230 = vector.broadcast %cst_78 : f32 to vector<16x64xf32>
    %231 = arith.maximumf %229, %230 : vector<16x64xf32>
    %c0_79 = arith.constant 0 : index
    %c0_80 = arith.constant 0 : index
    %232 = vector.load %arg7[%c0_79, %c0_80] : memref<64x64xf32, #tpu.memory_space<vmem>>, vector<64x64xf32>
    %c0_81 = arith.constant 0 : index
    %c0_82 = arith.constant 0 : index
    %233 = vector.load %arg8[%c0_81, %c0_82] : memref<8x64xf32, #tpu.memory_space<vmem>>, vector<8x64xf32>
    %c0_83 = arith.constant 0 : index
    %c0_84 = arith.constant 0 : index
    %234 = vector.load %arg9[%c0_83, %c0_84] : memref<8x64xf32, #tpu.memory_space<vmem>>, vector<8x64xf32>
    %c0_85 = arith.constant 0 : index
    %c0_86 = arith.constant 0 : index
    %235 = vector.load %arg10[%c0_85, %c0_86] : memref<1x64xf32, #tpu.memory_space<vmem>>, vector<1x64xf32>
    %cst_87 = arith.constant dense<0.000000e+00> : vector<16x64xf32>
    %236 = tpu.matmul %231, %232, %cst_87 {dimension_numbers = #tpu.dot_dimension_numbers<[1], [0], [0], [1], [0, 0, 1, 1], [], []>} : vector<16x64xf32>, vector<64x64xf32>, vector<16x64xf32> -> vector<16x64xf32>
    %cst_88 = arith.constant dense<0.000000e+00> : vector<8x16xf32>
    %237 = tpu.matmul %233, %236, %cst_88 {dimension_numbers = #tpu.dot_dimension_numbers<[1], [1], [0], [0], [0, 0, 1, 0], [], []>} : vector<8x64xf32>, vector<16x64xf32>, vector<8x16xf32> -> vector<8x16xf32>
    %cst_89 = arith.constant dense<0.000000e+00> : vector<16x8xf32>
    %238 = tpu.matmul %236, %234, %cst_89 {dimension_numbers = #tpu.dot_dimension_numbers<[1], [1], [0], [0], [0, 0, 1, 0], [], []>} : vector<16x64xf32>, vector<8x64xf32>, vector<16x8xf32> -> vector<16x8xf32>
    %239 = vector.extract_strided_slice %238 {offsets = [0, 0], sizes = [16, 1], strides = [1, 1]} : vector<16x8xf32> to vector<16x1xf32>
    %240 = vector.extract_strided_slice %237 {offsets = [0, 0], sizes = [1, 16], strides = [1, 1]} : vector<8x16xf32> to vector<1x16xf32>
    %241 = vector.broadcast %239 : vector<16x1xf32> to vector<16x16xf32>
    %242 = vector.broadcast %240 : vector<1x16xf32> to vector<16x16xf32>
    %243 = arith.addf %241, %242 : vector<16x16xf32>
    %cst_90 = arith.constant 0.000000e+00 : f32
    %244 = vector.broadcast %cst_90 : f32 to vector<16x16xf32>
    %245 = arith.cmpf ogt, %243, %244 : vector<16x16xf32>
    %cst_91 = arith.constant 2.000000e-01 : f32
    %246 = vector.broadcast %cst_91 : f32 to vector<16x16xf32>
    %247 = arith.mulf %246, %243 : vector<16x16xf32>
    %248 = arith.select %245, %243, %247 : vector<16x16xi1>, vector<16x16xf32>
    %cst_92 = arith.constant -1.000000e+30 : f32
    %249 = vector.broadcast %cst_92 : f32 to vector<16x16xf32>
    %250 = arith.select %2, %248, %249 : vector<16x16xi1>, vector<16x16xf32>
    %cst_93 = arith.constant dense<0xFF800000> : vector<16xf32>
    %251 = vector.multi_reduction <maximumf>, %250, %cst_93 [1] : vector<16x16xf32> to vector<16xf32>
    %252 = vector.shape_cast %251 : vector<16xf32> to vector<16x1xf32>
    %253 = vector.broadcast %252 : vector<16x1xf32> to vector<16x16xf32>
    %254 = arith.subf %250, %253 : vector<16x16xf32>
    %255 = math.exp %254 : vector<16x16xf32>
    %cst_94 = arith.constant 0.000000e+00 : f32
    %256 = vector.broadcast %cst_94 : f32 to vector<16x16xf32>
    %257 = arith.select %2, %255, %256 : vector<16x16xi1>, vector<16x16xf32>
    %cst_95 = arith.constant dense<0.000000e+00> : vector<16xf32>
    %258 = vector.multi_reduction <add>, %257, %cst_95 [1] : vector<16x16xf32> to vector<16xf32>
    %259 = vector.shape_cast %258 : vector<16xf32> to vector<16x1xf32>
    %cst_96 = arith.constant 1.000000e-30 : f32
    %260 = vector.broadcast %cst_96 : f32 to vector<16x1xf32>
    %261 = arith.maximumf %259, %260 : vector<16x1xf32>
    %262 = vector.broadcast %261 : vector<16x1xf32> to vector<16x16xf32>
    %263 = arith.divf %257, %262 : vector<16x16xf32>
    %264 = vector.extract_strided_slice %236 {offsets = [0, 0], sizes = [16, 8], strides = [1, 1]} : vector<16x64xf32> to vector<16x8xf32>
    %cst_97 = arith.constant dense<0.000000e+00> : vector<16x8xf32>
    %265 = tpu.matmul %263, %264, %cst_97 {dimension_numbers = #tpu.dot_dimension_numbers<[1], [0], [0], [1], [0, 0, 1, 1], [], []>} : vector<16x16xf32>, vector<16x8xf32>, vector<16x8xf32> -> vector<16x8xf32>
    %266 = vector.extract_strided_slice %238 {offsets = [0, 1], sizes = [16, 1], strides = [1, 1]} : vector<16x8xf32> to vector<16x1xf32>
    %267 = vector.extract_strided_slice %237 {offsets = [1, 0], sizes = [1, 16], strides = [1, 1]} : vector<8x16xf32> to vector<1x16xf32>
    %268 = vector.broadcast %266 : vector<16x1xf32> to vector<16x16xf32>
    %269 = vector.broadcast %267 : vector<1x16xf32> to vector<16x16xf32>
    %270 = arith.addf %268, %269 : vector<16x16xf32>
    %cst_98 = arith.constant 0.000000e+00 : f32
    %271 = vector.broadcast %cst_98 : f32 to vector<16x16xf32>
    %272 = arith.cmpf ogt, %270, %271 : vector<16x16xf32>
    %cst_99 = arith.constant 2.000000e-01 : f32
    %273 = vector.broadcast %cst_99 : f32 to vector<16x16xf32>
    %274 = arith.mulf %273, %270 : vector<16x16xf32>
    %275 = arith.select %272, %270, %274 : vector<16x16xi1>, vector<16x16xf32>
    %cst_100 = arith.constant -1.000000e+30 : f32
    %276 = vector.broadcast %cst_100 : f32 to vector<16x16xf32>
    %277 = arith.select %2, %275, %276 : vector<16x16xi1>, vector<16x16xf32>
    %cst_101 = arith.constant dense<0xFF800000> : vector<16xf32>
    %278 = vector.multi_reduction <maximumf>, %277, %cst_101 [1] : vector<16x16xf32> to vector<16xf32>
    %279 = vector.shape_cast %278 : vector<16xf32> to vector<16x1xf32>
    %280 = vector.broadcast %279 : vector<16x1xf32> to vector<16x16xf32>
    %281 = arith.subf %277, %280 : vector<16x16xf32>
    %282 = math.exp %281 : vector<16x16xf32>
    %cst_102 = arith.constant 0.000000e+00 : f32
    %283 = vector.broadcast %cst_102 : f32 to vector<16x16xf32>
    %284 = arith.select %2, %282, %283 : vector<16x16xi1>, vector<16x16xf32>
    %cst_103 = arith.constant dense<0.000000e+00> : vector<16xf32>
    %285 = vector.multi_reduction <add>, %284, %cst_103 [1] : vector<16x16xf32> to vector<16xf32>
    %286 = vector.shape_cast %285 : vector<16xf32> to vector<16x1xf32>
    %cst_104 = arith.constant 1.000000e-30 : f32
    %287 = vector.broadcast %cst_104 : f32 to vector<16x1xf32>
    %288 = arith.maximumf %286, %287 : vector<16x1xf32>
    %289 = vector.broadcast %288 : vector<16x1xf32> to vector<16x16xf32>
    %290 = arith.divf %284, %289 : vector<16x16xf32>
    %291 = vector.extract_strided_slice %236 {offsets = [0, 8], sizes = [16, 8], strides = [1, 1]} : vector<16x64xf32> to vector<16x8xf32>
    %cst_105 = arith.constant dense<0.000000e+00> : vector<16x8xf32>
    %292 = tpu.matmul %290, %291, %cst_105 {dimension_numbers = #tpu.dot_dimension_numbers<[1], [0], [0], [1], [0, 0, 1, 1], [], []>} : vector<16x16xf32>, vector<16x8xf32>, vector<16x8xf32> -> vector<16x8xf32>
    %293 = vector.extract_strided_slice %238 {offsets = [0, 2], sizes = [16, 1], strides = [1, 1]} : vector<16x8xf32> to vector<16x1xf32>
    %294 = vector.extract_strided_slice %237 {offsets = [2, 0], sizes = [1, 16], strides = [1, 1]} : vector<8x16xf32> to vector<1x16xf32>
    %295 = vector.broadcast %293 : vector<16x1xf32> to vector<16x16xf32>
    %296 = vector.broadcast %294 : vector<1x16xf32> to vector<16x16xf32>
    %297 = arith.addf %295, %296 : vector<16x16xf32>
    %cst_106 = arith.constant 0.000000e+00 : f32
    %298 = vector.broadcast %cst_106 : f32 to vector<16x16xf32>
    %299 = arith.cmpf ogt, %297, %298 : vector<16x16xf32>
    %cst_107 = arith.constant 2.000000e-01 : f32
    %300 = vector.broadcast %cst_107 : f32 to vector<16x16xf32>
    %301 = arith.mulf %300, %297 : vector<16x16xf32>
    %302 = arith.select %299, %297, %301 : vector<16x16xi1>, vector<16x16xf32>
    %cst_108 = arith.constant -1.000000e+30 : f32
    %303 = vector.broadcast %cst_108 : f32 to vector<16x16xf32>
    %304 = arith.select %2, %302, %303 : vector<16x16xi1>, vector<16x16xf32>
    %cst_109 = arith.constant dense<0xFF800000> : vector<16xf32>
    %305 = vector.multi_reduction <maximumf>, %304, %cst_109 [1] : vector<16x16xf32> to vector<16xf32>
    %306 = vector.shape_cast %305 : vector<16xf32> to vector<16x1xf32>
    %307 = vector.broadcast %306 : vector<16x1xf32> to vector<16x16xf32>
    %308 = arith.subf %304, %307 : vector<16x16xf32>
    %309 = math.exp %308 : vector<16x16xf32>
    %cst_110 = arith.constant 0.000000e+00 : f32
    %310 = vector.broadcast %cst_110 : f32 to vector<16x16xf32>
    %311 = arith.select %2, %309, %310 : vector<16x16xi1>, vector<16x16xf32>
    %cst_111 = arith.constant dense<0.000000e+00> : vector<16xf32>
    %312 = vector.multi_reduction <add>, %311, %cst_111 [1] : vector<16x16xf32> to vector<16xf32>
    %313 = vector.shape_cast %312 : vector<16xf32> to vector<16x1xf32>
    %cst_112 = arith.constant 1.000000e-30 : f32
    %314 = vector.broadcast %cst_112 : f32 to vector<16x1xf32>
    %315 = arith.maximumf %313, %314 : vector<16x1xf32>
    %316 = vector.broadcast %315 : vector<16x1xf32> to vector<16x16xf32>
    %317 = arith.divf %311, %316 : vector<16x16xf32>
    %318 = vector.extract_strided_slice %236 {offsets = [0, 16], sizes = [16, 8], strides = [1, 1]} : vector<16x64xf32> to vector<16x8xf32>
    %cst_113 = arith.constant dense<0.000000e+00> : vector<16x8xf32>
    %319 = tpu.matmul %317, %318, %cst_113 {dimension_numbers = #tpu.dot_dimension_numbers<[1], [0], [0], [1], [0, 0, 1, 1], [], []>} : vector<16x16xf32>, vector<16x8xf32>, vector<16x8xf32> -> vector<16x8xf32>
    %320 = vector.extract_strided_slice %238 {offsets = [0, 3], sizes = [16, 1], strides = [1, 1]} : vector<16x8xf32> to vector<16x1xf32>
    %321 = vector.extract_strided_slice %237 {offsets = [3, 0], sizes = [1, 16], strides = [1, 1]} : vector<8x16xf32> to vector<1x16xf32>
    %322 = vector.broadcast %320 : vector<16x1xf32> to vector<16x16xf32>
    %323 = vector.broadcast %321 : vector<1x16xf32> to vector<16x16xf32>
    %324 = arith.addf %322, %323 : vector<16x16xf32>
    %cst_114 = arith.constant 0.000000e+00 : f32
    %325 = vector.broadcast %cst_114 : f32 to vector<16x16xf32>
    %326 = arith.cmpf ogt, %324, %325 : vector<16x16xf32>
    %cst_115 = arith.constant 2.000000e-01 : f32
    %327 = vector.broadcast %cst_115 : f32 to vector<16x16xf32>
    %328 = arith.mulf %327, %324 : vector<16x16xf32>
    %329 = arith.select %326, %324, %328 : vector<16x16xi1>, vector<16x16xf32>
    %cst_116 = arith.constant -1.000000e+30 : f32
    %330 = vector.broadcast %cst_116 : f32 to vector<16x16xf32>
    %331 = arith.select %2, %329, %330 : vector<16x16xi1>, vector<16x16xf32>
    %cst_117 = arith.constant dense<0xFF800000> : vector<16xf32>
    %332 = vector.multi_reduction <maximumf>, %331, %cst_117 [1] : vector<16x16xf32> to vector<16xf32>
    %333 = vector.shape_cast %332 : vector<16xf32> to vector<16x1xf32>
    %334 = vector.broadcast %333 : vector<16x1xf32> to vector<16x16xf32>
    %335 = arith.subf %331, %334 : vector<16x16xf32>
    %336 = math.exp %335 : vector<16x16xf32>
    %cst_118 = arith.constant 0.000000e+00 : f32
    %337 = vector.broadcast %cst_118 : f32 to vector<16x16xf32>
    %338 = arith.select %2, %336, %337 : vector<16x16xi1>, vector<16x16xf32>
    %cst_119 = arith.constant dense<0.000000e+00> : vector<16xf32>
    %339 = vector.multi_reduction <add>, %338, %cst_119 [1] : vector<16x16xf32> to vector<16xf32>
    %340 = vector.shape_cast %339 : vector<16xf32> to vector<16x1xf32>
    %cst_120 = arith.constant 1.000000e-30 : f32
    %341 = vector.broadcast %cst_120 : f32 to vector<16x1xf32>
    %342 = arith.maximumf %340, %341 : vector<16x1xf32>
    %343 = vector.broadcast %342 : vector<16x1xf32> to vector<16x16xf32>
    %344 = arith.divf %338, %343 : vector<16x16xf32>
    %345 = vector.extract_strided_slice %236 {offsets = [0, 24], sizes = [16, 8], strides = [1, 1]} : vector<16x64xf32> to vector<16x8xf32>
    %cst_121 = arith.constant dense<0.000000e+00> : vector<16x8xf32>
    %346 = tpu.matmul %344, %345, %cst_121 {dimension_numbers = #tpu.dot_dimension_numbers<[1], [0], [0], [1], [0, 0, 1, 1], [], []>} : vector<16x16xf32>, vector<16x8xf32>, vector<16x8xf32> -> vector<16x8xf32>
    %347 = vector.extract_strided_slice %238 {offsets = [0, 4], sizes = [16, 1], strides = [1, 1]} : vector<16x8xf32> to vector<16x1xf32>
    %348 = vector.extract_strided_slice %237 {offsets = [4, 0], sizes = [1, 16], strides = [1, 1]} : vector<8x16xf32> to vector<1x16xf32>
    %349 = vector.broadcast %347 : vector<16x1xf32> to vector<16x16xf32>
    %350 = vector.broadcast %348 : vector<1x16xf32> to vector<16x16xf32>
    %351 = arith.addf %349, %350 : vector<16x16xf32>
    %cst_122 = arith.constant 0.000000e+00 : f32
    %352 = vector.broadcast %cst_122 : f32 to vector<16x16xf32>
    %353 = arith.cmpf ogt, %351, %352 : vector<16x16xf32>
    %cst_123 = arith.constant 2.000000e-01 : f32
    %354 = vector.broadcast %cst_123 : f32 to vector<16x16xf32>
    %355 = arith.mulf %354, %351 : vector<16x16xf32>
    %356 = arith.select %353, %351, %355 : vector<16x16xi1>, vector<16x16xf32>
    %cst_124 = arith.constant -1.000000e+30 : f32
    %357 = vector.broadcast %cst_124 : f32 to vector<16x16xf32>
    %358 = arith.select %2, %356, %357 : vector<16x16xi1>, vector<16x16xf32>
    %cst_125 = arith.constant dense<0xFF800000> : vector<16xf32>
    %359 = vector.multi_reduction <maximumf>, %358, %cst_125 [1] : vector<16x16xf32> to vector<16xf32>
    %360 = vector.shape_cast %359 : vector<16xf32> to vector<16x1xf32>
    %361 = vector.broadcast %360 : vector<16x1xf32> to vector<16x16xf32>
    %362 = arith.subf %358, %361 : vector<16x16xf32>
    %363 = math.exp %362 : vector<16x16xf32>
    %cst_126 = arith.constant 0.000000e+00 : f32
    %364 = vector.broadcast %cst_126 : f32 to vector<16x16xf32>
    %365 = arith.select %2, %363, %364 : vector<16x16xi1>, vector<16x16xf32>
    %cst_127 = arith.constant dense<0.000000e+00> : vector<16xf32>
    %366 = vector.multi_reduction <add>, %365, %cst_127 [1] : vector<16x16xf32> to vector<16xf32>
    %367 = vector.shape_cast %366 : vector<16xf32> to vector<16x1xf32>
    %cst_128 = arith.constant 1.000000e-30 : f32
    %368 = vector.broadcast %cst_128 : f32 to vector<16x1xf32>
    %369 = arith.maximumf %367, %368 : vector<16x1xf32>
    %370 = vector.broadcast %369 : vector<16x1xf32> to vector<16x16xf32>
    %371 = arith.divf %365, %370 : vector<16x16xf32>
    %372 = vector.extract_strided_slice %236 {offsets = [0, 32], sizes = [16, 8], strides = [1, 1]} : vector<16x64xf32> to vector<16x8xf32>
    %cst_129 = arith.constant dense<0.000000e+00> : vector<16x8xf32>
    %373 = tpu.matmul %371, %372, %cst_129 {dimension_numbers = #tpu.dot_dimension_numbers<[1], [0], [0], [1], [0, 0, 1, 1], [], []>} : vector<16x16xf32>, vector<16x8xf32>, vector<16x8xf32> -> vector<16x8xf32>
    %374 = vector.extract_strided_slice %238 {offsets = [0, 5], sizes = [16, 1], strides = [1, 1]} : vector<16x8xf32> to vector<16x1xf32>
    %375 = vector.extract_strided_slice %237 {offsets = [5, 0], sizes = [1, 16], strides = [1, 1]} : vector<8x16xf32> to vector<1x16xf32>
    %376 = vector.broadcast %374 : vector<16x1xf32> to vector<16x16xf32>
    %377 = vector.broadcast %375 : vector<1x16xf32> to vector<16x16xf32>
    %378 = arith.addf %376, %377 : vector<16x16xf32>
    %cst_130 = arith.constant 0.000000e+00 : f32
    %379 = vector.broadcast %cst_130 : f32 to vector<16x16xf32>
    %380 = arith.cmpf ogt, %378, %379 : vector<16x16xf32>
    %cst_131 = arith.constant 2.000000e-01 : f32
    %381 = vector.broadcast %cst_131 : f32 to vector<16x16xf32>
    %382 = arith.mulf %381, %378 : vector<16x16xf32>
    %383 = arith.select %380, %378, %382 : vector<16x16xi1>, vector<16x16xf32>
    %cst_132 = arith.constant -1.000000e+30 : f32
    %384 = vector.broadcast %cst_132 : f32 to vector<16x16xf32>
    %385 = arith.select %2, %383, %384 : vector<16x16xi1>, vector<16x16xf32>
    %cst_133 = arith.constant dense<0xFF800000> : vector<16xf32>
    %386 = vector.multi_reduction <maximumf>, %385, %cst_133 [1] : vector<16x16xf32> to vector<16xf32>
    %387 = vector.shape_cast %386 : vector<16xf32> to vector<16x1xf32>
    %388 = vector.broadcast %387 : vector<16x1xf32> to vector<16x16xf32>
    %389 = arith.subf %385, %388 : vector<16x16xf32>
    %390 = math.exp %389 : vector<16x16xf32>
    %cst_134 = arith.constant 0.000000e+00 : f32
    %391 = vector.broadcast %cst_134 : f32 to vector<16x16xf32>
    %392 = arith.select %2, %390, %391 : vector<16x16xi1>, vector<16x16xf32>
    %cst_135 = arith.constant dense<0.000000e+00> : vector<16xf32>
    %393 = vector.multi_reduction <add>, %392, %cst_135 [1] : vector<16x16xf32> to vector<16xf32>
    %394 = vector.shape_cast %393 : vector<16xf32> to vector<16x1xf32>
    %cst_136 = arith.constant 1.000000e-30 : f32
    %395 = vector.broadcast %cst_136 : f32 to vector<16x1xf32>
    %396 = arith.maximumf %394, %395 : vector<16x1xf32>
    %397 = vector.broadcast %396 : vector<16x1xf32> to vector<16x16xf32>
    %398 = arith.divf %392, %397 : vector<16x16xf32>
    %399 = vector.extract_strided_slice %236 {offsets = [0, 40], sizes = [16, 8], strides = [1, 1]} : vector<16x64xf32> to vector<16x8xf32>
    %cst_137 = arith.constant dense<0.000000e+00> : vector<16x8xf32>
    %400 = tpu.matmul %398, %399, %cst_137 {dimension_numbers = #tpu.dot_dimension_numbers<[1], [0], [0], [1], [0, 0, 1, 1], [], []>} : vector<16x16xf32>, vector<16x8xf32>, vector<16x8xf32> -> vector<16x8xf32>
    %401 = vector.extract_strided_slice %238 {offsets = [0, 6], sizes = [16, 1], strides = [1, 1]} : vector<16x8xf32> to vector<16x1xf32>
    %402 = vector.extract_strided_slice %237 {offsets = [6, 0], sizes = [1, 16], strides = [1, 1]} : vector<8x16xf32> to vector<1x16xf32>
    %403 = vector.broadcast %401 : vector<16x1xf32> to vector<16x16xf32>
    %404 = vector.broadcast %402 : vector<1x16xf32> to vector<16x16xf32>
    %405 = arith.addf %403, %404 : vector<16x16xf32>
    %cst_138 = arith.constant 0.000000e+00 : f32
    %406 = vector.broadcast %cst_138 : f32 to vector<16x16xf32>
    %407 = arith.cmpf ogt, %405, %406 : vector<16x16xf32>
    %cst_139 = arith.constant 2.000000e-01 : f32
    %408 = vector.broadcast %cst_139 : f32 to vector<16x16xf32>
    %409 = arith.mulf %408, %405 : vector<16x16xf32>
    %410 = arith.select %407, %405, %409 : vector<16x16xi1>, vector<16x16xf32>
    %cst_140 = arith.constant -1.000000e+30 : f32
    %411 = vector.broadcast %cst_140 : f32 to vector<16x16xf32>
    %412 = arith.select %2, %410, %411 : vector<16x16xi1>, vector<16x16xf32>
    %cst_141 = arith.constant dense<0xFF800000> : vector<16xf32>
    %413 = vector.multi_reduction <maximumf>, %412, %cst_141 [1] : vector<16x16xf32> to vector<16xf32>
    %414 = vector.shape_cast %413 : vector<16xf32> to vector<16x1xf32>
    %415 = vector.broadcast %414 : vector<16x1xf32> to vector<16x16xf32>
    %416 = arith.subf %412, %415 : vector<16x16xf32>
    %417 = math.exp %416 : vector<16x16xf32>
    %cst_142 = arith.constant 0.000000e+00 : f32
    %418 = vector.broadcast %cst_142 : f32 to vector<16x16xf32>
    %419 = arith.select %2, %417, %418 : vector<16x16xi1>, vector<16x16xf32>
    %cst_143 = arith.constant dense<0.000000e+00> : vector<16xf32>
    %420 = vector.multi_reduction <add>, %419, %cst_143 [1] : vector<16x16xf32> to vector<16xf32>
    %421 = vector.shape_cast %420 : vector<16xf32> to vector<16x1xf32>
    %cst_144 = arith.constant 1.000000e-30 : f32
    %422 = vector.broadcast %cst_144 : f32 to vector<16x1xf32>
    %423 = arith.maximumf %421, %422 : vector<16x1xf32>
    %424 = vector.broadcast %423 : vector<16x1xf32> to vector<16x16xf32>
    %425 = arith.divf %419, %424 : vector<16x16xf32>
    %426 = vector.extract_strided_slice %236 {offsets = [0, 48], sizes = [16, 8], strides = [1, 1]} : vector<16x64xf32> to vector<16x8xf32>
    %cst_145 = arith.constant dense<0.000000e+00> : vector<16x8xf32>
    %427 = tpu.matmul %425, %426, %cst_145 {dimension_numbers = #tpu.dot_dimension_numbers<[1], [0], [0], [1], [0, 0, 1, 1], [], []>} : vector<16x16xf32>, vector<16x8xf32>, vector<16x8xf32> -> vector<16x8xf32>
    %428 = vector.extract_strided_slice %238 {offsets = [0, 7], sizes = [16, 1], strides = [1, 1]} : vector<16x8xf32> to vector<16x1xf32>
    %429 = vector.extract_strided_slice %237 {offsets = [7, 0], sizes = [1, 16], strides = [1, 1]} : vector<8x16xf32> to vector<1x16xf32>
    %430 = vector.broadcast %428 : vector<16x1xf32> to vector<16x16xf32>
    %431 = vector.broadcast %429 : vector<1x16xf32> to vector<16x16xf32>
    %432 = arith.addf %430, %431 : vector<16x16xf32>
    %cst_146 = arith.constant 0.000000e+00 : f32
    %433 = vector.broadcast %cst_146 : f32 to vector<16x16xf32>
    %434 = arith.cmpf ogt, %432, %433 : vector<16x16xf32>
    %cst_147 = arith.constant 2.000000e-01 : f32
    %435 = vector.broadcast %cst_147 : f32 to vector<16x16xf32>
    %436 = arith.mulf %435, %432 : vector<16x16xf32>
    %437 = arith.select %434, %432, %436 : vector<16x16xi1>, vector<16x16xf32>
    %cst_148 = arith.constant -1.000000e+30 : f32
    %438 = vector.broadcast %cst_148 : f32 to vector<16x16xf32>
    %439 = arith.select %2, %437, %438 : vector<16x16xi1>, vector<16x16xf32>
    %cst_149 = arith.constant dense<0xFF800000> : vector<16xf32>
    %440 = vector.multi_reduction <maximumf>, %439, %cst_149 [1] : vector<16x16xf32> to vector<16xf32>
    %441 = vector.shape_cast %440 : vector<16xf32> to vector<16x1xf32>
    %442 = vector.broadcast %441 : vector<16x1xf32> to vector<16x16xf32>
    %443 = arith.subf %439, %442 : vector<16x16xf32>
    %444 = math.exp %443 : vector<16x16xf32>
    %cst_150 = arith.constant 0.000000e+00 : f32
    %445 = vector.broadcast %cst_150 : f32 to vector<16x16xf32>
    %446 = arith.select %2, %444, %445 : vector<16x16xi1>, vector<16x16xf32>
    %cst_151 = arith.constant dense<0.000000e+00> : vector<16xf32>
    %447 = vector.multi_reduction <add>, %446, %cst_151 [1] : vector<16x16xf32> to vector<16xf32>
    %448 = vector.shape_cast %447 : vector<16xf32> to vector<16x1xf32>
    %cst_152 = arith.constant 1.000000e-30 : f32
    %449 = vector.broadcast %cst_152 : f32 to vector<16x1xf32>
    %450 = arith.maximumf %448, %449 : vector<16x1xf32>
    %451 = vector.broadcast %450 : vector<16x1xf32> to vector<16x16xf32>
    %452 = arith.divf %446, %451 : vector<16x16xf32>
    %453 = vector.extract_strided_slice %236 {offsets = [0, 56], sizes = [16, 8], strides = [1, 1]} : vector<16x64xf32> to vector<16x8xf32>
    %cst_153 = arith.constant dense<0.000000e+00> : vector<16x8xf32>
    %454 = tpu.matmul %452, %453, %cst_153 {dimension_numbers = #tpu.dot_dimension_numbers<[1], [0], [0], [1], [0, 0, 1, 1], [], []>} : vector<16x16xf32>, vector<16x8xf32>, vector<16x8xf32> -> vector<16x8xf32>
    %455 = tpu.concatenate %265, %292, %319, %346, %373, %400, %427, %454 in 1 : vector<16x8xf32>, vector<16x8xf32>, vector<16x8xf32>, vector<16x8xf32>, vector<16x8xf32>, vector<16x8xf32>, vector<16x8xf32>, vector<16x8xf32> -> vector<16x64xf32>
    %456 = vector.broadcast %235 : vector<1x64xf32> to vector<16x64xf32>
    %457 = arith.addf %455, %456 : vector<16x64xf32>
    %c0_154 = arith.constant 0 : index
    %c0_155 = arith.constant 0 : index
    %458 = vector.load %arg2[%c0_154, %c0_155] : memref<2x16xf32, #tpu.memory_space<vmem>>, vector<2x16xf32>
    %cst_156 = arith.constant dense<0.000000e+00> : vector<2x64xf32>
    %459 = tpu.matmul %458, %457, %cst_156 {dimension_numbers = #tpu.dot_dimension_numbers<[1], [0], [0], [1], [0, 0, 1, 1], [], []>} : vector<2x16xf32>, vector<16x64xf32>, vector<2x64xf32> -> vector<2x64xf32>
    %c0_157 = arith.constant 0 : index
    %c0_158 = arith.constant 0 : index
    %460 = vector.load %arg11[%c0_157, %c0_158] : memref<64x4xf32, #tpu.memory_space<vmem>>, vector<64x4xf32>
    %cst_159 = arith.constant dense<0.000000e+00> : vector<2x4xf32>
    %461 = tpu.matmul %459, %460, %cst_159 {dimension_numbers = #tpu.dot_dimension_numbers<[1], [0], [0], [1], [0, 0, 1, 1], [], []>} : vector<2x64xf32>, vector<64x4xf32>, vector<2x4xf32> -> vector<2x4xf32>
    %c0_160 = arith.constant 0 : index
    %c0_161 = arith.constant 0 : index
    %462 = vector.load %arg12[%c0_160, %c0_161] : memref<1x4xf32, #tpu.memory_space<vmem>>, vector<1x4xf32>
    %463 = vector.broadcast %462 : vector<1x4xf32> to vector<2x4xf32>
    %464 = arith.addf %461, %463 : vector<2x4xf32>
    %c0_162 = arith.constant 0 : index
    %c0_163 = arith.constant 0 : index
    %465 = vector.load %arg13[%c0_162, %c0_163] : memref<2x4xf32, #tpu.memory_space<vmem>>, vector<2x4xf32>
    tpu.vector_store %arg13[%c0_162, %c0_163], %464 {strides = array<i32>} : memref<2x4xf32, #tpu.memory_space<vmem>>, vector<2x4xf32>,
    return
  }
}

</mosaic_0001>

<bundles_post_ra>
// kernel: tpu_custom_call.1
= control target key start
LH: loop header
LB: loop body
LE: loop exit
PB: predicated region body
PF: predicated region fallthrough
CT: control target
= control target key end

     0   :  { %18 = vsyncpa [#allocation3], 0  ;;  %s4950_s0 = inlined_call_operand.vmem [shape: f32[16,16], index: 0, kind: input, shape index: {}]   ;;  %s4951_s1 = inlined_call_operand.hbm [shape: f32[16,16], index: 1, kind: input, shape index: {}]   ;;  %s4952_s2 = inlined_call_operand.hbm [shape: f32[2,16], index: 2, kind: input, shape index: {}]   ;;  %s4953_s3 = inlined_call_operand.hbm [shape: f32[16,64], index: 3, kind: input, shape index: {}]   ;;  %s4954_s4 = inlined_call_operand.hbm [shape: f32[8,64], index: 4, kind: input, shape index: {}]   ;;  %s4955_s5 = inlined_call_operand.hbm [shape: f32[8,64], index: 5, kind: input, shape index: {}]   ;;  %s4956_s6 = inlined_call_operand.hbm [shape: f32[1,64], index: 6, kind: input, shape index: {}]   ;;  %s4957_s7 = inlined_call_operand.vmem [shape: f32[64,64], index: 7, kind: input, shape index: {}]   ;;  %s4958_s8 = inlined_call_operand.hbm [shape: f32[8,64], index: 8, kind: input, shape index: {}]   ;;  %s4959_s9 = inlined_call_operand.hbm [shape: f32[8,64], index: 9, kind: input, shape index: {}]   ;;  %s4960_s10 = inlined_call_operand.vmem [shape: f32[1,64], index: 10, kind: input, shape index: {}]   ;;  %s4961_s11 = inlined_call_operand.vmem [shape: f32[64,4], index: 11, kind: input, shape index: {}]   ;;  %s4962_s12 = inlined_call_operand.vmem [shape: f32[1,4], index: 12, kind: input, shape index: {}]   ;;  %s4963_s13 = inlined_call_operand.hbm [shape: f32[2,4], index: 13, kind: output, shape index: {}]  }
   0x1   :  { %19 = vsyncpa [#allocation6], 0 }
   0x2   :  { %20 = vsyncpa [#allocation9], 0 }
   0x3   :  { %21 = vsyncpa [#allocation12], 0 }
   0x4   :  { %22 = vsyncpa [#allocation15], 0 }
   0x5   :  { %23 = vsyncpa [#allocation4], 0  ;;  %s3870_s25 = smov [#allocation5]   ;;  %s3871_s27 = smov [#allocation8]  }
   0x6   :  { %s44_s26 = sshll.u32 %s3870_s25, 4  ;;  %s66_s28 = sshll.u32 %s3871_s27, 4  ;;  %s45_s26 = int_to_ptr.vmem [resolvable:$true] %s44_s26  ;;  %s67_s28 = int_to_ptr.vmem [resolvable:$true] %s66_s28 }
   0x7   :  { %s3686_s29 = scalar_lea.vmem %s45_s26, 32  ;;  %p3691_p1 = scmp.lt.s32.totalorder %s45_s26, %s45_s26 }
   0x8   :  { %p3687_p0 = scmp.ne.s32.totalorder %s45_s26, %s3686_s29  ;;  %p3692_p2 = scmp.lt.s32.totalorder %s3686_s29, %s3686_s29 }
   0xa   :  { %p3693_p3 = por %p3692_p2, %p3691_p1 }
   0xc   :  { %p3694_p4 = pnand %p3693_p3, %p3687_p0 }
   0xe   :  { %3697 = shalt.err (!%p3694_p4)
}
   0xf   :  { %47 = dma.hbm_to_vmem [thread:$0]  %s4952_s2, 32, %s45_s26, [#allocation6]  }
  0x10   :  { %s3706_s15 = scalar_lea.vmem %s67_s28, 128  ;;  %p3711_p6 = scmp.lt.s32.totalorder %s67_s28, %s67_s28 }
  0x11   :  { %p3707_p5 = scmp.ne.s32.totalorder %s67_s28, %s3706_s15  ;;  %p3712_p7 = scmp.lt.s32.totalorder %s3706_s15, %s3706_s15 }
  0x13   :  { %p3713_p8 = por %p3712_p7, %p3711_p6 }
  0x15   :  { %p3714_p9 = pnand %p3713_p8, %p3707_p5 }
  0x17   :  { %3717 = shalt.err (!%p3714_p9)
}
  0x18   :  { %69 = dma.hbm_to_vmem [thread:$0]  %s4954_s4, 128, %s67_s28, [#allocation9]  }
  0x19   :  { %s3872_s18 = smov [#allocation11]   ;;  %s3873_s20 = smov [#allocation2]  }
  0x1a   :  { %s86_s19 = sshll.u32 %s3872_s18, 4  ;;  %s31_s21 = sshll.u32 %s3873_s20, 4  ;;  %s87_s19 = int_to_ptr.vmem [resolvable:$true] %s86_s19  ;;  %s32_s21 = int_to_ptr.vmem [resolvable:$true] %s31_s21 }
  0x1b   :  { %s3726_s22 = scalar_lea.vmem %s87_s19, 16  ;;  %s3730_s2 = scalar_lea.vmem %s87_s19, 32 }
  0x1c   :  { %p3727_p10 = scmp.ne.s32.totalorder %s87_s19, %s3726_s22  ;;  %p3731_p11 = scmp.lt.s32.totalorder %s87_s19, %s87_s19 }
  0x1d   :  { %p3732_p12 = scmp.lt.s32.totalorder %s3730_s2, %s3726_s22 }
  0x1f   :  { %p3733_p13 = por %p3732_p12, %p3731_p11 }
  0x21   :  { %p3734_p0 = pnand %p3733_p13, %p3727_p10 }
  0x23   :  { %3737 = shalt.err (!%p3734_p0)
}
  0x24   :  { %89 = dma.hbm_to_vmem [thread:$0]  %s4956_s6, 16, %s87_s19, [#allocation12]  }
  0x25   :  { %s3746_s25 = scalar_lea.vmem %s32_s21, 256  ;;  %p3751_p2 = scmp.lt.s32.totalorder %s32_s21, %s32_s21 }
  0x26   :  { %p3747_p1 = scmp.ne.s32.totalorder %s32_s21, %s3746_s25  ;;  %p3752_p3 = scmp.lt.s32.totalorder %s3746_s25, %s3746_s25 }
  0x28   :  { %p3753_p4 = por %p3752_p3, %p3751_p2 }
  0x2a   :  { %p3754_p5 = pnand %p3753_p4, %p3747_p1 }
  0x2c   :  { %3757 = shalt.err (!%p3754_p5)
}
  0x2d   :  { %s3874_s4 = smov 128   ;;  %s3875_s26 = smov 8  }
  0x2e   :  { %37 = dma.hbm_to_vmem [thread:$0]  %s4951_s1, 256, %s32_s21, [#allocation3], %s3874_s4, %s3874_s4, %s3875_s26  }
  0x2f   :  { %s3876_s29 = smov [#allocation7]   ;;  %s3877_s14 = smov [#allocation10]  }
  0x30   :  { %s53_s30 = sshll.u32 %s3876_s29, 4  ;;  %s76_s15 = sshll.u32 %s3877_s14, 4  ;;  %s54_s30 = int_to_ptr.vmem [resolvable:$true] %s53_s30  ;;  %s77_s15 = int_to_ptr.vmem [resolvable:$true] %s76_s15 }
  0x31   :  { %s3766_s6 = scalar_lea.vmem %s54_s30, 256  ;;  %p3771_p7 = scmp.lt.s32.totalorder %s54_s30, %s54_s30 }
  0x32   :  { %p3767_p6 = scmp.ne.s32.totalorder %s54_s30, %s3766_s6  ;;  %p3772_p8 = scmp.lt.s32.totalorder %s3766_s6, %s3766_s6 }
  0x34   :  { %p3773_p9 = por %p3772_p8, %p3771_p7 }
  0x36   :  { %p3774_p10 = pnand %p3773_p9, %p3767_p6 }
  0x38   :  { %3777 = shalt.err (!%p3774_p10)
}
  0x39   :  { %59 = dma.hbm_to_vmem [thread:$0]  %s4953_s3, 256, %s54_s30, [#allocation6], %s3874_s4, %s3874_s4, %s3875_s26  }
  0x3a   :  { %s3786_s18 = scalar_lea.vmem %s77_s15, 128  ;;  %p3791_p12 = scmp.lt.s32.totalorder %s77_s15, %s77_s15 }
  0x3b   :  { %p3787_p11 = scmp.ne.s32.totalorder %s77_s15, %s3786_s18  ;;  %p3792_p13 = scmp.lt.s32.totalorder %s3786_s18, %s3786_s18 }
  0x3d   :  { %p3793_p0 = por %p3792_p13, %p3791_p12 }
  0x3f   :  { %p3794_p1 = pnand %p3793_p0, %p3787_p11 }
  0x41   :  { %3797 = shalt.err (!%p3794_p1)
}
  0x42   :  { %79 = dma.hbm_to_vmem [thread:$0]  %s4955_s5, 128, %s77_s15, [#allocation9]  }
  0x43   :  { %s3878_s20 = smov [#allocation13]   ;;  %s3879_s22 = smov [#allocation14]  }
  0x44   :  { %s98_s21 = sshll.u32 %s3878_s20, 4  ;;  %s108_s2 = sshll.u32 %s3879_s22, 4  ;;  %s99_s21 = int_to_ptr.vmem [resolvable:$true] %s98_s21  ;;  %s109_s2 = int_to_ptr.vmem [resolvable:$true] %s108_s2 }
  0x45   :  { %s3806_s23 = scalar_lea.vmem %s99_s21, 128  ;;  %p3811_p3 = scmp.lt.s32.totalorder %s99_s21, %s99_s21 }
  0x46   :  { %p3807_p2 = scmp.ne.s32.totalorder %s99_s21, %s3806_s23  ;;  %p3812_p4 = scmp.lt.s32.totalorder %s3806_s23, %s3806_s23 }
  0x48   :  { %p3813_p5 = por %p3812_p4, %p3811_p3 }
  0x4a   :  { %p3814_p6 = pnand %p3813_p5, %p3807_p2 }
  0x4c   :  { %3817 = shalt.err (!%p3814_p6)
}
  0x4d   :  { %101 = dma.hbm_to_vmem [thread:$0]  %s4958_s8, 128, %s99_s21, [#allocation12]  }
  0x4e   :  { %s3826_s25 = scalar_lea.vmem %s109_s2, 128  ;;  %p3831_p8 = scmp.lt.s32.totalorder %s109_s2, %s109_s2 }
  0x4f   :  { %p3827_p7 = scmp.ne.s32.totalorder %s109_s2, %s3826_s25  ;;  %p3832_p9 = scmp.lt.s32.totalorder %s3826_s25, %s3826_s25 }
  0x51   :  { %p3833_p10 = por %p3832_p9, %p3831_p8 }
  0x53   :  { %p3834_p11 = pnand %p3833_p10, %p3827_p7 }
  0x55   :  { %3837 = shalt.err (!%p3834_p11)
}
  0x56   :  { %111 = dma.hbm_to_vmem [thread:$0]  %s4959_s9, 128, %s109_s2, [#allocation15]  }
  0x57   :  { %3858 = dma.done.wait [#allocation3], 256  }
  0x58   :  { %3859 = vsyncadd [#allocation3], 4294967040 }
  0x59   :  { %3860 = dma.done.wait [#allocation6], 288  }
  0x5a   :  { %3861 = vsyncadd [#allocation6], 4294967008 }
  0x5b   :  { %3862 = dma.done.wait [#allocation9], 256  }
  0x5c   :  { %3863 = vsyncadd [#allocation9], 4294967040 }
  0x5d   :  { %3864 = dma.done.wait [#allocation12], 144  }
  0x5e   :  { %3865 = vsyncadd [#allocation12], 4294967152 }
  0x5f   :  { %3866 = dma.done.wait [#allocation15], 128  }
  0x60   :  { %3867 = vsyncadd [#allocation15], 4294967168  ;;  %vm153_vm0 = vcmask 130048   ;;  %v149_v0 = vld [vmem:[#allocation7 + $0x8] sm:$0xff]  ;;  %v148_v1 = vld [vmem:[#allocation7] sm:$0xff]  ;;  %v3880_v4 = vmov 0.0   ;;  %v403_v21 = vlaneseq }
  0x61   :  { %v146_v2 = vld [vmem:[%s4950_s0] sm:$0xff]  ;;  %3296 = vmatprep.subr.mxu1 %v149_v0  ;;  %v147_v3 = vld [vmem:[%s4950_s0 + $0x8] sm:$0xff]  ;;  %vm3881_vm1 = vmmov 0   ;;  %vm235_vm2 = vcmask 523264   ;;  %v3882_v9 = vmov 1   ;;  %v3883_v10 = vmov 0  }
  0x62   :  { %3300 = vmatprep.mubr.msk.f32.mxu1 %vm153_vm0, %v146_v2  ;;  %3297 = vmatpush3.msra.mxu1 %v149_v0  ;;  %v151_v7 = vld [vmem:[#allocation10] sm:$0xff]  ;;  %v150_v8 = vld [vmem:[#allocation8] sm:$0xff]  ;;  %v3884_v14 = vmov 2   ;;  %v3885_v15 = vmov 3   ;;  %v3886_v16 = vmov 4   ;;  %v3887_v17 = vmov 6  }
  0x63   :  { %3298 = vmatprep.subr.mxu1 %v148_v1  ;;  %3519 = vset.pattern.permute.xlu1 %v3882_v9  ;;  %v3888_v19 = vmov 5   ;;  %v3889_v20 = vmov 7   ;;  %v4051_v22 = vshrl.u32 %v403_v21, 7  ;;  %v4063_v27 = vld [vmem:[#allocation2 + $0x8] sm:$0xff]  ;;  %s3890_s0 = smov 120   ;;  %s3891_s29 = smov 112  }
  0x64   :  { %3299 = vmatpush3.msra.mxu1 %v148_v1  ;;  %3518 = vset.pattern.permute.xlu0 %v3883_v10  ;;  %vm145_vm3 = vcmp.gt.f32.partialorder %v4063_v27, 0.0  ;;  %s3892_s30 = smov 104   ;;  %s3893_s14 = smov 88  }
  0x65   :  { %3301 = vmatmul.mubr.msk.f32.vlgmr.msra.gmra.mxu1 %vm153_vm0, %v147_v3  ;;  %3303 = vmatprep.subr.mxu1 %v3880_v4  ;;  %v534_v23 = vsub.s32 1, %v4051_v22  ;;  %v405_v24 = vsub.s32 0, %v4051_v22  ;;  %v669_v30 = vsub.s32 2, %v4051_v22  ;;  %v804_v31 = vsub.s32 3, %v4051_v22  ;;  %s3894_s15 = smov 96   ;;  %s3895_s6 = smov 80  }
  0x66   :  { %3307 = vmatprep.mubr.msk.f32.mxu1 %vm3881_vm1, %v3880_v4  ;;  %v939_v42 = vsub.s32 4, %v4051_v22  ;;  %v1209_v49 = vsub.s32 6, %v4051_v22  ;;  %v1074_v56 = vsub.s32 5, %v4051_v22  ;;  %s3896_s16 = smov 72   ;;  %s3897_s1 = smov 16  }
  0x67   :  { %s3898_s2 = smov 24   ;;  %s3899_s24 = smov 32  }
  0x68   :  { %s3900_s27 = smov 40   ;;  %s3901_s19 = smov 48  }
  0x69   :  { %s3902_s20 = smov 56   ;;  %s3903_s8 = smov [#allocation16]  }
 0x125   :  { %v4011_v5 = vpop.f32.mrf.mxu1 }
 0x126   :  { %3304 = vmatpush3.xpose.msk.msra.mxu1 %vm235_vm2, %v4011_v5  ;;  %3315 = vmatprep.subr.mxu0 %v4011_v5 }
 0x127   :  { %v4016_v6 = vpop.f32.mrf.mxu1  ;;  %3316 = vmatpush3.msra.mxu0 %v4011_v5  ;;  %3305 = vmatprep.subr.mxu1 %v3880_v4 }
 0x128   :  { %3317 = vmatprep.subr.mxu0 %v4016_v6 }
 0x129   :  { %3318 = vmatpush3.msra.mxu0 %v4016_v6 }
 0x12a   :  { %3306 = vmatpush3.xpose.msk.msra.mxu1 %vm235_vm2, %v4016_v6 }
 0x12b   :  { %3310 = vmatprep.subr.msk.mxu1 %vm235_vm2, %v151_v7 }
 0x12d   :  { %3308 = vmatmul.mubr.msk.f32.vlgmr.msra.gmra.mxu1 %vm235_vm2, %v150_v8 }
 0x12e   :  { %3311 = vmatpush3.xpose.msk.msra.mxu1 %vm235_vm2, %v151_v7  ;;  %3312 = vmatprep.mubr.msk.f32.mxu1 %vm235_vm2, %v4016_v6 }
 0x131   :  { %3313 = vmatmul.mubr.msk.f32.vlgmr.msra.gmra.mxu1 %vm235_vm2, %v4011_v5 }
 0x1ed   :  { %v4033_v11 = vpop.f32.mrf.mxu1 }
 0x1ee   :  { %v4058_v25 = vrot.slane %v4033_v11, %v534_v23  ;;  %v406_v26 = vrot.slane %v4033_v11, %v405_v24  ;;  %v4072_v36 = vrot.slane %v4033_v11, %v669_v30  ;;  %v4077_v37 = vrot.slane %v4033_v11, %v804_v31 }
 0x1ef   :  { %v3309_v12 = vpop.f32.mrf.mxu1  ;;  %v4098_v52 = vrot.slane %v4033_v11, %v939_v42  ;;  %v4109_v60 = vrot.slane %v4033_v11, %v1209_v49  ;;  %v4121_v1 = vrot.slane %v4033_v11, %v1074_v56 }
 0x1f1   :  { %v3314_v13 = vpop.f32.mrf.mxu1 }
 0x1f2   :  { %529 = vperm.xlu1 %3519, %v3314_v13   ;;  %400 = vperm.xlu0 %3518, %v3314_v13  }
 0x1f3   :  { %v384_v18 = vpop.f32.mrf.mxu1 }
 0x1f6   :  { %3520 = vset.pattern.permute.xlu1 %v3884_v14  ;;  %3521 = vset.pattern.permute.xlu0 %v3885_v15 }
 0x1f7   :  { %664 = vperm.xlu1 %3520, %v3314_v13   ;;  %799 = vperm.xlu0 %3521, %v3314_v13  }
 0x1fb   :  { %3522 = vset.pattern.permute.xlu1 %v3886_v16  ;;  %3524 = vset.pattern.permute.xlu0 %v3887_v17 }
 0x1fc   :  { %934 = vperm.xlu1 %3522, %v3314_v13   ;;  %1204 = vperm.xlu0 %3524, %v3314_v13  }
 0x200   :  { %3523 = vset.pattern.permute.xlu1 %v3888_v19  ;;  %3526 = vset.pattern.permute.xlu0 %v3883_v10 }
 0x201   :  { %1069 = vperm.xlu1 %3523, %v3314_v13   ;;  %395 = vperm.xlu0 %3526, %v384_v18  }
 0x205   :  { %3525 = vset.pattern.permute.xlu1 %v3889_v20  ;;  %3528 = vset.pattern.permute.xlu0 %v3884_v14 }
 0x206   :  { %1339 = vperm.xlu1 %3525, %v3314_v13   ;;  %660 = vperm.xlu0 %3528, %v384_v18  }
 0x20a   :  { %3527 = vset.pattern.permute.xlu1 %v3882_v9  ;;  %3531 = vset.pattern.permute.xlu0 %v3888_v19 }
 0x20b   :  { %525 = vperm.xlu1 %3527, %v384_v18   ;;  %1065 = vperm.xlu0 %3531, %v384_v18  }
 0x20f   :  { %3529 = vset.pattern.permute.xlu1 %v3885_v15  ;;  %3535 = vset.pattern.permute.xlu0 %v3882_v9 }
 0x210   :  { %795 = vperm.xlu1 %3529, %v384_v18  }
 0x214   :  { %3530 = vset.pattern.permute.xlu1 %v3886_v16 }
 0x215   :  { %930 = vperm.xlu1 %3530, %v384_v18  }
 0x219   :  { %3532 = vset.pattern.permute.xlu1 %v3887_v17 }
 0x21a   :  { %1200 = vperm.xlu1 %3532, %v384_v18  }
 0x21e   :  { %3533 = vset.pattern.permute.xlu1 %v3889_v20 }
 0x21f   :  { %1335 = vperm.xlu1 %3533, %v384_v18  }
 0x223   :  { %3534 = vset.pattern.permute.xlu1 %v3883_v10 }
 0x26d   :  { %v530_v28 = vpop.permute.xlu1 %529  ;;  %v401_v29 = vpop.permute.xlu0 %400 }
 0x26e   :  { %v537_v32 = vadd.f32 %v4058_v25, %v530_v28  ;;  %v408_v33 = vadd.f32 %v406_v26, %v401_v29  ;;  %v1344_v29 = vsub.s32 7, %v4051_v22 }
 0x270   :  { %v541_v34 = vmul.f32 0.2, %v537_v32  ;;  %v412_v35 = vmul.f32 0.2, %v408_v33  ;;  %vm539_vm4 = vcmp.gt.f32.partialorder %v537_v32, 0.0  ;;  %vm410_vm5 = vcmp.gt.f32.partialorder %v408_v33, 0.0 }
 0x272   :  { %v665_v38 = vpop.permute.xlu1 %664  ;;  %v800_v39 = vpop.permute.xlu0 %799  ;;  %v543_v40 = vsel %vm539_vm4, %v537_v32, %v541_v34  ;;  %v414_v41 = vsel %vm410_vm5, %v408_v33, %v412_v35 }
 0x273   :  { %v672_v43 = vadd.f32 %v4072_v36, %v665_v38  ;;  %v807_v44 = vadd.f32 %v4077_v37, %v800_v39  ;;  %v4084_v45 = vsel %vm145_vm3, %v543_v40, -1e+30  ;;  %v4088_v46 = vsel %vm145_vm3, %v414_v41, -1e+30  ;;  %v4137_v40 = vld [vmem:[#allocation2] sm:$0xff] }
 0x274   :  { %v549_v47 = vsel %vm153_vm0, %v4084_v45, -inf  ;;  %v420_v48 = vsel %vm153_vm0, %v4088_v46, -inf  ;;  %vm144_vm12 = vcmp.gt.f32.partialorder %v4137_v40, 0.0 }
 0x275   :  { %v676_v50 = vmul.f32 0.2, %v672_v43  ;;  %v811_v51 = vmul.f32 0.2, %v807_v44  ;;  %550 = vmax.xlane.f32.xlu0 %v549_v47  ;;  %421 = vmax.xlane.f32.xlu1 %v420_v48  ;;  %vm674_vm6 = vcmp.gt.f32.partialorder %v672_v43, 0.0  ;;  %vm809_vm7 = vcmp.gt.f32.partialorder %v807_v44, 0.0 }
 0x277   :  { %v935_v53 = vpop.permute.xlu1 %934  ;;  %v1205_v54 = vpop.permute.xlu0 %1204  ;;  %v678_v55 = vsel %vm674_vm6, %v672_v43, %v676_v50  ;;  %v813_v57 = vsel %vm809_vm7, %v807_v44, %v811_v51 }
 0x278   :  { %v942_v58 = vadd.f32 %v4098_v52, %v935_v53  ;;  %v4104_v59 = vsel %vm145_vm3, %v678_v55, -1e+30  ;;  %v4115_v63 = vsel %vm145_vm3, %v813_v57, -1e+30  ;;  %v1212_v0 = vadd.f32 %v4109_v60, %v1205_v54 }
 0x279   :  { %v684_v61 = vsel %vm153_vm0, %v4104_v59, -inf  ;;  %v819_v12 = vsel %vm153_vm0, %v4115_v63, -inf }
 0x27a   :  { %v946_v62 = vmul.f32 0.2, %v942_v58  ;;  %685 = vmax.xlane.f32.xlu0 %v684_v61  ;;  %vm944_vm8 = vcmp.gt.f32.partialorder %v942_v58, 0.0  ;;  %v1216_v18 = vmul.f32 0.2, %v1212_v0  ;;  %vm1214_vm10 = vcmp.gt.f32.partialorder %v1212_v0, 0.0 }
 0x27c   :  { %v1070_v2 = vpop.permute.xlu1 %1069  ;;  %v396_v3 = vpop.permute.xlu0 %395  ;;  %v948_v7 = vsel %vm944_vm8, %v942_v58, %v946_v62  ;;  %v1218_v39 = vsel %vm1214_vm10, %v1212_v0, %v1216_v18  ;;  %vm1530_vm10 = vcmask 195584  }
 0x27d   :  { %v1077_v8 = vadd.f32 %v4121_v1, %v1070_v2  ;;  %v4128_v13 = vsel %vm145_vm3, %v948_v7, -1e+30  ;;  %v407_v28 = vadd.f32 %v406_v26, %v396_v3  ;;  %v4142_v26 = vrot.slane %v4033_v11, %v1344_v29 }
 0x27e   :  { %820 = vmax.xlane.f32.xlu0 %v819_v12  ;;  %v954_v33 = vsel %vm153_vm0, %v4128_v13, -inf  ;;  %v4150_v44 = vsel %vm145_vm3, %v1218_v39, -1e+30 }
 0x27f   :  { %v1081_v21 = vmul.f32 0.2, %v1077_v8  ;;  %vm1079_vm9 = vcmp.gt.f32.partialorder %v1077_v8, 0.0  ;;  %v411_v38 = vmul.f32 0.2, %v407_v28  ;;  %vm409_vm11 = vcmp.gt.f32.partialorder %v407_v28, 0.0 }
 0x280   :  { %v1224_v51 = vsel %vm153_vm0, %v4150_v44, -inf }
 0x281   :  { %v1340_v32 = vpop.permute.xlu1 %1339  ;;  %v1083_v34 = vsel %vm1079_vm9, %v1077_v8, %v1081_v21  ;;  %v413_v11 = vsel %vm409_vm11, %v407_v28, %v411_v38  ;;  %v661_v2 = vpop.permute.xlu0 %660  ;;  %vm1525_vm9 = vcmask 64512   ;;  %vm1533_vm11 = vcmask 261120  }
 0x282   :  { %955 = vmax.xlane.f32.xlu0 %v954_v33  ;;  %v4135_v35 = vsel %vm145_vm3, %v1083_v34, -1e+30  ;;  %v1347_v47 = vadd.f32 %v4142_v26, %v1340_v32  ;;  %v4161_v53 = vsel %vm144_vm12, %v413_v11, -1e+30  ;;  %v671_v7 = vadd.f32 %v4072_v36, %v661_v2 }
 0x283   :  { %v1089_v41 = vsel %vm153_vm0, %v4135_v35, -inf }
 0x284   :  { %v1351_v54 = vmul.f32 0.2, %v1347_v47  ;;  %vm1349_vm14 = vcmp.gt.f32.partialorder %v1347_v47, 0.0  ;;  %v675_v8 = vmul.f32 0.2, %v671_v7  ;;  %vm673_vm15 = vcmp.gt.f32.partialorder %v671_v7, 0.0 }
 0x286   :  { %v526_v43 = vpop.permute.xlu1 %525  ;;  %1090 = vmax.xlane.f32.xlu0 %v1089_v41  ;;  %574 = vrot.lane.b32.xlu1 %v4011_v5, %s3890_s0  ;;  %v1353_v58 = vsel %vm1349_vm14, %v1347_v47, %v1351_v54  ;;  %v677_v32 = vsel %vm673_vm15, %v671_v7, %v675_v8  ;;  %v1066_v33 = vpop.permute.xlu0 %1065  ;;  %vm1539_vm14 = vcmask 392192   ;;  %vm1542_vm15 = vcmask 457728  }
 0x287   :  { %v536_v48 = vadd.f32 %v4058_v25, %v526_v43  ;;  %v417_v25 = vsel %vm153_vm0, %v4161_v53, -inf  ;;  %v4177_v62 = vsel %vm145_vm3, %v1353_v58, -1e+30  ;;  %v4194_v34 = vsel %vm144_vm12, %v677_v32, -1e+30 }
 0x288   :  { %v1359_v0 = vsel %vm153_vm0, %v4177_v62, -inf }
 0x289   :  { %v540_v50 = vmul.f32 0.2, %v536_v48  ;;  %vm538_vm13 = vcmp.gt.f32.partialorder %v536_v48, 0.0 }
 0x28a   :  { %1225 = vmax.xlane.f32.xlu0 %v1224_v51  ;;  %709 = vrot.lane.b32.xlu1 %v4011_v5, %s3891_s29 }
 0x28b   :  { %v542_v55 = vsel %vm538_vm13, %v536_v48, %v540_v50  ;;  %v796_v3 = vpop.permute.xlu1 %795  ;;  %vm1536_vm13 = vcmask 326656  }
 0x28c   :  { %v4169_v57 = vsel %vm144_vm12, %v542_v55, -1e+30  ;;  %v806_v12 = vadd.f32 %v4077_v37, %v796_v3  ;;  %v1076_v37 = vadd.f32 %v4121_v1, %v1066_v33 }
 0x28d   :  { %v546_v61 = vsel %vm153_vm0, %v4169_v57, -inf }
 0x28e   :  { %844 = vrot.lane.b32.xlu1 %v4011_v5, %s3892_s30  ;;  %418 = vmax.xlane.f32.xlu0 %v417_v25  ;;  %v810_v21 = vmul.f32 0.2, %v806_v12  ;;  %vm808_vm4 = vcmp.gt.f32.partialorder %v806_v12, 0.0  ;;  %v1080_v43 = vmul.f32 0.2, %v1076_v37  ;;  %vm1078_vm6 = vcmp.gt.f32.partialorder %v1076_v37, 0.0 }
 0x290   :  { %v931_v18 = vpop.permute.xlu1 %930  ;;  %v812_v39 = vsel %vm808_vm4, %v806_v12, %v810_v21  ;;  %v1082_v55 = vsel %vm1078_vm6, %v1076_v37, %v1080_v43 }
 0x291   :  { %v941_v28 = vadd.f32 %v4098_v52, %v931_v18  ;;  %v681_v52 = vsel %vm153_vm0, %v4194_v34, -inf  ;;  %v4203_v41 = vsel %vm144_vm12, %v812_v39, -1e+30  ;;  %v4219_v25 = vsel %vm144_vm12, %v1082_v55, -1e+30 }
 0x292   :  { %842 = vrot.lane.b32.xlu1 %v4016_v6, %s3892_s30  ;;  %547 = vmax.xlane.f32.xlu0 %v546_v61  ;;  %v816_v1 = vsel %vm153_vm0, %v4203_v41, -inf }
 0x293   :  { %v945_v38 = vmul.f32 0.2, %v941_v28  ;;  %vm943_vm5 = vcmp.gt.f32.partialorder %v941_v28, 0.0 }
 0x295   :  { %v1201_v36 = vpop.permute.xlu1 %1200  ;;  %v947_v48 = vsel %vm943_vm5, %v941_v28, %v945_v38 }
 0x296   :  { %1114 = vrot.lane.b32.xlu1 %v4011_v5, %s3893_s14  ;;  %1360 = vmax.xlane.f32.xlu0 %v1359_v0  ;;  %v1211_v47 = vadd.f32 %v4109_v60, %v1201_v36  ;;  %v4212_v50 = vsel %vm144_vm12, %v947_v48, -1e+30  ;;  %v1086_v0 = vsel %vm153_vm0, %v4219_v25, -inf }
 0x297   :  { %v951_v60 = vsel %vm153_vm0, %v4212_v50, -inf }
 0x298   :  { %v1215_v51 = vmul.f32 0.2, %v1211_v47  ;;  %vm1213_vm7 = vcmp.gt.f32.partialorder %v1211_v47, 0.0 }
 0x29a   :  { %v1336_v11 = vpop.permute.xlu1 %1335  ;;  %v1217_v61 = vsel %vm1213_vm7, %v1211_v47, %v1215_v51 }
 0x29b   :  { %v1346_v54 = vadd.f32 %v4142_v26, %v1336_v11  ;;  %v4225_v26 = vsel %vm144_vm12, %v1217_v61, -1e+30 }
 0x29c   :  { %v1221_v3 = vsel %vm153_vm0, %v4225_v26, -inf }
 0x29d   :  { %v1350_v58 = vmul.f32 0.2, %v1346_v54  ;;  %vm1348_vm8 = vcmp.gt.f32.partialorder %v1346_v54, 0.0 }
 0x29f   :  { %v1352_v2 = vsel %vm1348_vm8, %v1346_v54, %v1350_v58 }
 0x2a0   :  { %v4231_v7 = vsel %vm144_vm12, %v1352_v2, -1e+30 }
 0x2a1   :  { %v1356_v8 = vsel %vm153_vm0, %v4231_v7, -inf }
 0x2ac   :  { %572 = vrot.lane.b32.xlu0 %v4016_v6, %s3890_s0 }
 0x2b0   :  { %707 = vrot.lane.b32.xlu0 %v4016_v6, %s3891_s29 }
 0x2b4   :  { %979 = vrot.lane.b32.xlu0 %v4011_v5, %s3894_s15 }
 0x2b8   :  { %977 = vrot.lane.b32.xlu0 %v4016_v6, %s3894_s15 }
 0x2ba   :  { %682 = vmax.xlane.f32.xlu1 %v681_v52 }
 0x2bc   :  { %1249 = vrot.lane.b32.xlu0 %v4011_v5, %s3895_s6 }
 0x2be   :  { %817 = vmax.xlane.f32.xlu1 %v816_v1 }
 0x2c2   :  { %952 = vmax.xlane.f32.xlu1 %v951_v60 }
 0x2c6   :  { %1087 = vmax.xlane.f32.xlu1 %v1086_v0 }
 0x2ca   :  { %1222 = vmax.xlane.f32.xlu1 %v1221_v3 }
 0x2ce   :  { %1357 = vmax.xlane.f32.xlu1 %v1356_v8 }
 0x2df   :  { %1112 = vrot.lane.b32.xlu1 %v4016_v6, %s3893_s14 }
 0x2e3   :  { %1384 = vrot.lane.b32.xlu1 %v4011_v5, %s3896_s16 }
 0x2fe   :  { %v551_v12 = vpop.xlane.xlu0 %550  ;;  %v422_v18 = vpop.xlane.xlu1 %421 }
 0x2ff   :  { %v553_v21 = vsub.f32 %v4084_v45, %v551_v12  ;;  %v424_v28 = vsub.f32 %v4088_v46, %v422_v18 }
 0x301   :  { %v556_v32 = vmul.f32 1.442695, %v553_v21  ;;  %v427_v33 = vmul.f32 1.442695, %v424_v28 }
 0x302   :  { %v575_v36 = vpop.permute.xlu1 %574 }
 0x303   :  { %3550 = vpow2.f32 %v556_v32  ;;  %v686_v37 = vpop.xlane.xlu0 %685  ;;  %3322 = vmatprep.subr.mxu1 %v575_v36 }
 0x304   :  { %3552 = vpow2.f32 %v427_v33  ;;  %v688_v38 = vsub.f32 %v4104_v59, %v686_v37  ;;  %3323 = vmatpush3.msra.mxu1 %v575_v36 }
 0x306   :  { %v691_v39 = vmul.f32 1.442695, %v688_v38  ;;  %v4242_v52 = vpop.permute.xlu1 %709 }
 0x307   :  { %v821_v5 = vpop.xlane.xlu0 %820  ;;  %3329 = vmatprep.subr.mxu0 %v4242_v52 }
 0x308   :  { %3554 = vpow2.f32 %v691_v39  ;;  %v823_v45 = vsub.f32 %v4115_v63, %v821_v5 }
 0x30a   :  { %v826_v46 = vmul.f32 1.442695, %v823_v45 }
 0x30b   :  { %v956_v43 = vpop.xlane.xlu0 %955 }
 0x30c   :  { %3556 = vpow2.f32 %v826_v46  ;;  %v958_v47 = vsub.f32 %v4128_v13, %v956_v43 }
 0x30e   :  { %v961_v48 = vmul.f32 1.442695, %v958_v47 }
 0x30f   :  { %v1091_v11 = vpop.xlane.xlu0 %1090 }
 0x310   :  { %v3551_v1 = vpop.eup %3550  ;;  %3558 = vpow2.f32 %v961_v48  ;;  %v1093_v59 = vsub.f32 %v4135_v35, %v1091_v11  ;;  %v4286_v48 = vpop.permute.xlu1 %844 }
 0x311   :  { %v3553_v51 = vpop.eup %3552  ;;  %v4257_v13 = vsel %vm145_vm3, %v3551_v1, 0.0 }
 0x312   :  { %v1096_v54 = vmul.f32 1.442695, %v1093_v59  ;;  %v4250_v55 = vsel %vm145_vm3, %v3553_v51, 0.0  ;;  %v563_v0 = vsel %vm153_vm0, %v4257_v13, 0.0 }
 0x313   :  { %v1226_v60 = vpop.xlane.xlu0 %1225  ;;  %v434_v63 = vsel %vm153_vm0, %v4250_v55, 0.0 }
 0x314   :  { %3560 = vpow2.f32 %v1096_v54  ;;  %v1228_v58 = vsub.f32 %v4150_v44, %v1226_v60  ;;  %435 = vadd.xlane.f32.xlu0 %v434_v63 }
 0x315   :  { %v3555_v61 = vpop.eup %3554 }
 0x316   :  { %v1231_v35 = vmul.f32 1.442695, %v1228_v58  ;;  %v4264_v8 = vsel %vm145_vm3, %v3555_v61, 0.0 }
 0x317   :  { %v419_v2 = vpop.xlane.xlu0 %418  ;;  %v698_v18 = vsel %vm153_vm0, %v4264_v8, 0.0 }
 0x318   :  { %3562 = vpow2.f32 %v1231_v35  ;;  %564 = vadd.xlane.f32.xlu0 %v563_v0  ;;  %v423_v3 = vsub.f32 %v4161_v53, %v419_v2  ;;  %v4315_v2 = vpop.permute.xlu1 %842 }
 0x319   :  { %v3557_v44 = vpop.eup %3556 }
 0x31a   :  { %v425_v12 = vmul.f32 1.442695, %v423_v3  ;;  %v4271_v32 = vsel %vm145_vm3, %v3557_v44, 0.0 }
 0x31b   :  { %v548_v21 = vpop.xlane.xlu0 %547  ;;  %v833_v36 = vsel %vm153_vm0, %v4271_v32, 0.0 }
 0x31c   :  { %3564 = vpow2.f32 %v425_v12  ;;  %699 = vadd.xlane.f32.xlu0 %v698_v18  ;;  %v552_v28 = vsub.f32 %v4169_v57, %v548_v21  ;;  %v4317_v3 = vpop.permute.xlu1 %1114 }
 0x31d   :  { %v3559_v33 = vpop.eup %3558 }
 0x31e   :  { %v554_v53 = vmul.f32 1.442695, %v552_v28  ;;  %v4278_v39 = vsel %vm145_vm3, %v3559_v33, 0.0 }
 0x31f   :  { %v1361_v37 = vpop.xlane.xlu0 %1360  ;;  %v968_v45 = vsel %vm153_vm0, %v4278_v39, 0.0 }
 0x320   :  { %3566 = vpow2.f32 %v554_v53  ;;  %834 = vadd.xlane.f32.xlu0 %v833_v36  ;;  %v1363_v38 = vsub.f32 %v4177_v62, %v1361_v37 }
 0x321   :  { %v3561_v5 = vpop.eup %3560 }
 0x322   :  { %v1366_v57 = vmul.f32 1.442695, %v1363_v38  ;;  %v4284_v43 = vsel %vm145_vm3, %v3561_v5, 0.0 }
 0x323   :  { %v573_v46 = vpop.permute.xlu0 %572  ;;  %v1103_v62 = vsel %vm153_vm0, %v4284_v43, 0.0 }
 0x324   :  { %3568 = vpow2.f32 %v1366_v57  ;;  %969 = vadd.xlane.f32.xlu0 %v968_v45  ;;  %3324 = vmatprep.subr.mxu1 %v573_v46 }
 0x325   :  { %v3563_v47 = vpop.eup %3562  ;;  %3325 = vmatpush3.msra.mxu1 %v573_v46 }
 0x326   :  { %3336 = vmatprep.subr.mxu1 %v4286_v48  ;;  %v4293_v11 = vsel %vm145_vm3, %v3563_v47, 0.0 }
 0x327   :  { %v1238_v51 = vsel %vm153_vm0, %v4293_v11, 0.0 }
 0x328   :  { %1104 = vadd.xlane.f32.xlu0 %v1103_v62 }
 0x329   :  { %v3565_v1 = vpop.eup %3564 }
 0x32a   :  { %v4297_v59 = vsel %vm144_vm12, %v3565_v1, 0.0 }
 0x32b   :  { %v431_v54 = vsel %vm153_vm0, %v4297_v59, 0.0 }
 0x32c   :  { %1239 = vadd.xlane.f32.xlu0 %v1238_v51  ;;  %432 = vadd.xlane.f32.xlu1 %v431_v54 }
 0x32d   :  { %v3567_v60 = vpop.eup %3566 }
 0x32e   :  { %v4305_v63 = vsel %vm144_vm12, %v3567_v60, 0.0 }
 0x32f   :  { %v560_v58 = vsel %vm153_vm0, %v4305_v63, 0.0 }
 0x330   :  { %561 = vadd.xlane.f32.xlu1 %v560_v58 }
 0x331   :  { %v3569_v61 = vpop.eup %3568 }
 0x332   :  { %v4311_v35 = vsel %vm145_vm3, %v3569_v61, 0.0 }
 0x333   :  { %v1373_v0 = vsel %vm153_vm0, %v4311_v35, 0.0 }
 0x334   :  { %1374 = vadd.xlane.f32.xlu0 %v1373_v0 }
 0x343   :  { %v683_v44 = vpop.xlane.xlu1 %682 }
 0x344   :  { %v687_v12 = vsub.f32 %v4194_v34, %v683_v44 }
 0x346   :  { %v689_v18 = vmul.f32 1.442695, %v687_v12 }
 0x347   :  { %v818_v21 = vpop.xlane.xlu1 %817 }
 0x348   :  { %3570 = vpow2.f32 %v689_v18  ;;  %v822_v28 = vsub.f32 %v4203_v41, %v818_v21 }
 0x34a   :  { %v824_v33 = vmul.f32 1.442695, %v822_v28  ;;  %1247 = vrot.lane.b32.xlu0 %v4016_v6, %s3895_s6 }
 0x34b   :  { %v953_v53 = vpop.xlane.xlu1 %952 }
 0x34c   :  { %3572 = vpow2.f32 %v824_v33  ;;  %v957_v36 = vsub.f32 %v4212_v50, %v953_v53 }
 0x34e   :  { %v959_v37 = vmul.f32 1.442695, %v957_v36  ;;  %v708_v36 = vpop.permute.xlu0 %707 }
 0x34f   :  { %v1088_v38 = vpop.xlane.xlu1 %1087 }
 0x350   :  { %3574 = vpow2.f32 %v959_v37  ;;  %v1092_v5 = vsub.f32 %v4219_v25, %v1088_v38 }
 0x352   :  { %v1094_v57 = vmul.f32 1.442695, %v1092_v5  ;;  %v4365_v37 = vpop.permute.xlu0 %979 }
 0x353   :  { %v1223_v34 = vpop.xlane.xlu1 %1222 }
 0x354   :  { %3576 = vpow2.f32 %v1094_v57  ;;  %v1227_v45 = vsub.f32 %v4225_v26, %v1223_v34 }
 0x355   :  { %v3571_v46 = vpop.eup %3570 }
 0x356   :  { %v1229_v41 = vmul.f32 1.442695, %v1227_v45  ;;  %v4328_v47 = vsel %vm144_vm12, %v3571_v46, 0.0  ;;  %v4367_v38 = vpop.permute.xlu0 %977 }
 0x357   :  { %v1358_v62 = vpop.xlane.xlu1 %1357  ;;  %v695_v50 = vsel %vm153_vm0, %v4328_v47, 0.0 }
 0x358   :  { %3578 = vpow2.f32 %v1229_v41  ;;  %v1362_v1 = vsub.f32 %v4231_v7, %v1358_v62  ;;  %696 = vadd.xlane.f32.xlu1 %v695_v50 }
 0x359   :  { %v3573_v25 = vpop.eup %3572 }
 0x35a   :  { %v1364_v51 = vmul.f32 1.442695, %v1362_v1  ;;  %v4335_v54 = vsel %vm144_vm12, %v3573_v25, 0.0  ;;  %v4369_v5 = vpop.permute.xlu0 %1249 }
 0x35b   :  { %v830_v26 = vsel %vm153_vm0, %v4335_v54, 0.0  ;;  %v4371_v57 = vpop.permute.xlu1 %1112 }
 0x35c   :  { %3580 = vpow2.f32 %v1364_v51  ;;  %831 = vadd.xlane.f32.xlu1 %v830_v26 }
 0x35d   :  { %v3575_v60 = vpop.eup %3574 }
 0x35e   :  { %v4341_v58 = vsel %vm144_vm12, %v3575_v60, 0.0 }
 0x35f   :  { %v965_v7 = vsel %vm153_vm0, %v4341_v58, 0.0  ;;  %v4373_v45 = vpop.permute.xlu1 %1384 }
 0x360   :  { %966 = vadd.xlane.f32.xlu1 %v965_v7 }
 0x361   :  { %v3577_v61 = vpop.eup %3576 }
 0x362   :  { %v4347_v0 = vsel %vm144_vm12, %v3577_v61, 0.0 }
 0x363   :  { %v1100_v44 = vsel %vm153_vm0, %v4347_v0, 0.0 }
 0x364   :  { %1101 = vadd.xlane.f32.xlu1 %v1100_v44 }
 0x365   :  { %v3579_v12 = vpop.eup %3578 }
 0x366   :  { %v4353_v18 = vsel %vm144_vm12, %v3579_v12, 0.0 }
 0x367   :  { %v1235_v21 = vsel %vm153_vm0, %v4353_v18, 0.0 }
 0x368   :  { %1236 = vadd.xlane.f32.xlu1 %v1235_v21 }
 0x369   :  { %v3581_v28 = vpop.eup %3580 }
 0x36a   :  { %v4359_v33 = vsel %vm144_vm12, %v3581_v28, 0.0 }
 0x36b   :  { %v1370_v53 = vsel %vm153_vm0, %v4359_v33, 0.0 }
 0x36c   :  { %1371 = vadd.xlane.f32.xlu1 %v1370_v53 }
 0x37d   :  { %1382 = vrot.lane.b32.xlu1 %v4016_v6, %s3896_s16 }
 0x39d   :  { %v436_v34 = vpop.xlane.xlu0 %435 }
 0x39e   :  { %v438_v46 = vmax.f32 %v436_v34, 1e-30 }
 0x3a0   :  { %3582 = vrcp.f32 %v438_v46 }
 0x3a1   :  { %v565_v41 = vpop.xlane.xlu0 %564 }
 0x3a2   :  { %v567_v1 = vmax.f32 %v565_v41, 1e-30 }
 0x3ad   :  { %v3583_v51 = vpop.eup %3582 }
 0x3ae   :  { %v442_v61 = vmul.f32 %v3583_v51, %v4250_v55  ;;  %v700_v55 = vpop.xlane.xlu0 %699 }
 0x3b5   :  { %v433_v62 = vpop.xlane.xlu1 %432 }
 0x3b6   :  { %v437_v50 = vmax.f32 %v433_v62, 1e-30 }
 0x3b8   :  { %3584 = vrcp.f32 %v437_v50 }
 0x3b9   :  { %v562_v6 = vpop.xlane.xlu1 %561  ;;  %3586 = vrcp.f32 %v567_v1 }
 0x3ba   :  { %v566_v25 = vmax.f32 %v562_v6, 1e-30 }
 0x3bc   :  { %3588 = vrcp.f32 %v566_v25 }
 0x3c5   :  { %v3585_v26 = vpop.eup %3584 }
 0x3c6   :  { %v440_v60 = vmul.f32 %v3585_v26, %v4297_v59  ;;  %v3587_v7 = vpop.eup %3586  ;;  %v702_v59 = vmax.f32 %v700_v55, 1e-30 }
 0x3c7   :  { %v571_v21 = vmul.f32 %v3587_v7, %v4257_v13 }
 0x3c8   :  { %3319 = vmatprep.mubr.msk.f32.mxu0 %vm153_vm0, %v440_v60  ;;  %3590 = vrcp.f32 %v702_v59 }
 0x3c9   :  { %v3589_v44 = vpop.eup %3588  ;;  %3320 = vmatmul.mubr.msk.f32.vlgmr.msra.gmra.mxu0 %vm153_vm0, %v442_v61 }
 0x3ca   :  { %v569_v12 = vmul.f32 %v3589_v44, %v4305_v63  ;;  %3330 = vmatpush3.msra.mxu0 %v4242_v52  ;;  %v835_v52 = vpop.xlane.xlu0 %834 }
 0x3cb   :  { %3331 = vmatprep.subr.mxu0 %v708_v36  ;;  %v837_v53 = vmax.f32 %v835_v52, 1e-30 }
 0x3cc   :  { %3326 = vmatprep.mubr.msk.f32.mxu1 %vm153_vm0, %v569_v12  ;;  %3332 = vmatpush3.msra.mxu0 %v708_v36 }
 0x3cd   :  { %3327 = vmatmul.mubr.msk.f32.vlgmr.msra.gmra.mxu1 %vm153_vm0, %v571_v21  ;;  %3343 = vmatprep.subr.mxu0 %v4365_v37 }
 0x3ce   :  { %3337 = vmatpush3.msra.mxu1 %v4286_v48  ;;  %v970_v13 = vpop.xlane.xlu0 %969 }
 0x3cf   :  { %3338 = vmatprep.subr.mxu1 %v4315_v2  ;;  %v972_v48 = vmax.f32 %v970_v13, 1e-30 }
 0x3d0   :  { %3339 = vmatpush3.msra.mxu1 %v4315_v2 }
 0x3d1   :  { %3350 = vmatprep.subr.mxu1 %v4317_v3 }
 0x3d2   :  { %v1105_v34 = vpop.xlane.xlu0 %1104 }
 0x3d3   :  { %v1107_v2 = vmax.f32 %v1105_v34, 1e-30 }
 0x3d5   :  { %v3591_v51 = vpop.eup %3590 }
 0x3d6   :  { %v1240_v50 = vpop.xlane.xlu0 %1239  ;;  %v706_v21 = vmul.f32 %v3591_v51, %v4264_v8 }
 0x3d7   :  { %v1242_v25 = vmax.f32 %v1240_v50, 1e-30 }
 0x3da   :  { %v1375_v26 = vpop.xlane.xlu0 %1374 }
 0x3db   :  { %v1377_v12 = vmax.f32 %v1375_v26, 1e-30  ;;  %v1558_v26 = vld [vmem:[%s4957_s7 + $0x18] sm:$0xff] }
 0x3e1   :  { %v697_v63 = vpop.xlane.xlu1 %696 }
 0x3e2   :  { %v701_v28 = vmax.f32 %v697_v63, 1e-30 }
 0x3e4   :  { %3592 = vrcp.f32 %v701_v28 }
 0x3e5   :  { %v832_v36 = vpop.xlane.xlu1 %831  ;;  %3594 = vrcp.f32 %v837_v53  ;;  %v1248_v53 = vpop.permute.xlu0 %1247 }
 0x3e6   :  { %v836_v46 = vmax.f32 %v832_v36, 1e-30 }
 0x3e8   :  { %3596 = vrcp.f32 %v836_v46 }
 0x3e9   :  { %v967_v41 = vpop.xlane.xlu1 %966  ;;  %3598 = vrcp.f32 %v972_v48 }
 0x3ea   :  { %v971_v62 = vmax.f32 %v967_v41, 1e-30 }
 0x3ec   :  { %3600 = vrcp.f32 %v971_v62 }
 0x3ed   :  { %v1102_v1 = vpop.xlane.xlu1 %1101  ;;  %3602 = vrcp.f32 %v1107_v2  ;;  %v1561_v2 = vld [vmem:[%s4957_s7 + $0x30] sm:$0xff] }
 0x3ee   :  { %v1106_v6 = vmax.f32 %v1102_v1, 1e-30  ;;  %v1560_v1 = vld [vmem:[%s4957_s7 + $0x28] sm:$0xff] }
 0x3f0   :  { %3604 = vrcp.f32 %v1106_v6 }
 0x3f1   :  { %v3593_v60 = vpop.eup %3592  ;;  %v1237_v7 = vpop.xlane.xlu1 %1236  ;;  %3606 = vrcp.f32 %v1242_v25  ;;  %v1559_v25 = vld [vmem:[%s4957_s7 + $0x20] sm:$0xff] }
 0x3f2   :  { %v1241_v61 = vmax.f32 %v1237_v7, 1e-30  ;;  %v704_v44 = vmul.f32 %v3593_v60, %v4328_v47  ;;  %v3595_v55 = vpop.eup %3594  ;;  %v1557_v7 = vld [vmem:[%s4957_s7 + $0x10] sm:$0xff] }
 0x3f3   :  { %v841_v47 = vmul.f32 %v3595_v55, %v4271_v32 }
 0x3f4   :  { %3608 = vrcp.f32 %v1241_v61  ;;  %3333 = vmatprep.mubr.msk.f32.mxu0 %vm153_vm0, %v704_v44  ;;  %v1556_v44 = vld [vmem:[%s4957_s7 + $0x8] sm:$0xff] }
 0x3f5   :  { %v3597_v52 = vpop.eup %3596  ;;  %v1372_v59 = vpop.xlane.xlu1 %1371  ;;  %3334 = vmatmul.mubr.msk.f32.vlgmr.msra.gmra.mxu0 %vm153_vm0, %v706_v21  ;;  %3610 = vrcp.f32 %v1377_v12  ;;  %v1555_v12 = vld [vmem:[%s4957_s7] sm:$0xff] }
 0x3f6   :  { %v1376_v13 = vmax.f32 %v1372_v59, 1e-30  ;;  %3344 = vmatpush3.msra.mxu0 %v4365_v37  ;;  %v839_v63 = vmul.f32 %v3597_v52, %v4335_v54  ;;  %v3599_v28 = vpop.eup %3598 }
 0x3f7   :  { %3345 = vmatprep.subr.mxu0 %v4367_v38  ;;  %v976_v37 = vmul.f32 %v3599_v28, %v4278_v39 }
 0x3f8   :  { %3612 = vrcp.f32 %v1376_v13  ;;  %3346 = vmatpush3.msra.mxu0 %v4367_v38  ;;  %3340 = vmatprep.mubr.msk.f32.mxu1 %vm153_vm0, %v839_v63 }
 0x3f9   :  { %v3601_v8 = vpop.eup %3600  ;;  %3357 = vmatprep.subr.mxu0 %v4369_v5  ;;  %3341 = vmatmul.mubr.msk.f32.vlgmr.msra.gmra.mxu1 %vm153_vm0, %v841_v47 }
 0x3fa   :  { %3351 = vmatpush3.msra.mxu1 %v4317_v3  ;;  %v974_v54 = vmul.f32 %v3601_v8, %v4341_v58  ;;  %v3603_v32 = vpop.eup %3602 }
 0x3fb   :  { %3352 = vmatprep.subr.mxu1 %v4371_v57  ;;  %v1111_v58 = vmul.f32 %v3603_v32, %v4284_v43 }
 0x3fc   :  { %3353 = vmatpush3.msra.mxu1 %v4371_v57  ;;  %3347 = vmatprep.mubr.msk.f32.mxu0 %vm153_vm0, %v974_v54  ;;  %v1383_v57 = vpop.permute.xlu1 %1382 }
 0x3fd   :  { %v3605_v38 = vpop.eup %3604  ;;  %3364 = vmatprep.subr.mxu1 %v4373_v45  ;;  %3348 = vmatmul.mubr.msk.f32.vlgmr.msra.gmra.mxu0 %vm153_vm0, %v976_v37 }
 0x3fe   :  { %3358 = vmatpush3.msra.mxu0 %v4369_v5  ;;  %v1109_v3 = vmul.f32 %v3605_v38, %v4347_v0  ;;  %v3607_v36 = vpop.eup %3606 }
 0x3ff   :  { %3359 = vmatprep.subr.mxu0 %v1248_v53  ;;  %v1246_v5 = vmul.f32 %v3607_v36, %v4293_v11 }
 0x400   :  { %3360 = vmatpush3.msra.mxu0 %v1248_v53  ;;  %3354 = vmatprep.mubr.msk.f32.mxu1 %vm153_vm0, %v1109_v3 }
 0x401   :  { %v3609_v39 = vpop.eup %3608  ;;  %3355 = vmatmul.mubr.msk.f32.vlgmr.msra.gmra.mxu1 %vm153_vm0, %v1111_v58 }
 0x402   :  { %3365 = vmatpush3.msra.mxu1 %v4373_v45  ;;  %v1244_v34 = vmul.f32 %v3609_v39, %v4353_v18  ;;  %v3611_v46 = vpop.eup %3610 }
 0x403   :  { %3366 = vmatprep.subr.mxu1 %v1383_v57  ;;  %v1381_v48 = vmul.f32 %v3611_v46, %v4311_v35  ;;  %v1562_v35 = vld [vmem:[%s4957_s7 + $0x38] sm:$0xff] }
 0x404   :  { %3367 = vmatpush3.msra.mxu1 %v1383_v57  ;;  %3361 = vmatprep.mubr.msk.f32.mxu0 %vm153_vm0, %v1244_v34 }
 0x405   :  { %v3613_v43 = vpop.eup %3612  ;;  %3362 = vmatmul.mubr.msk.f32.vlgmr.msra.gmra.mxu0 %vm153_vm0, %v1246_v5  ;;  %3390 = vmatprep.subr.mxu1 %v3880_v4 }
 0x406   :  { %v1379_v0 = vmul.f32 %v3613_v43, %v4359_v33  ;;  %3371 = vmatprep.subr.mxu0 %v1562_v35 }
 0x407   :  { %3372 = vmatpush3.msra.mxu0 %v1562_v35 }
 0x408   :  { %3368 = vmatprep.mubr.msk.f32.mxu1 %vm153_vm0, %v1379_v0  ;;  %3373 = vmatprep.subr.mxu0 %v1561_v2 }
 0x409   :  { %3369 = vmatmul.mubr.msk.f32.vlgmr.msra.gmra.mxu1 %vm153_vm0, %v1381_v48  ;;  %3374 = vmatpush3.msra.mxu0 %v1561_v2 }
 0x40a   :  { %3394 = vmatprep.mubr.msk.f32.mxu1 %vm3881_vm1, %v3880_v4  ;;  %3375 = vmatprep.subr.mxu0 %v1560_v1 }
 0x40b   :  { %3376 = vmatpush3.msra.mxu0 %v1560_v1 }
 0x40c   :  { %3377 = vmatprep.subr.mxu0 %v1559_v25 }
 0x40d   :  { %3378 = vmatpush3.msra.mxu0 %v1559_v25 }
 0x40e   :  { %3379 = vmatprep.subr.mxu0 %v1558_v26 }
 0x40f   :  { %3380 = vmatpush3.msra.mxu0 %v1558_v26 }
 0x410   :  { %3381 = vmatprep.subr.mxu0 %v1557_v7 }
 0x411   :  { %3382 = vmatpush3.msra.mxu0 %v1557_v7 }
 0x412   :  { %3383 = vmatprep.subr.mxu0 %v1556_v44 }
 0x413   :  { %3384 = vmatpush3.msra.mxu0 %v1556_v44 }
 0x414   :  { %3385 = vmatprep.subr.mxu0 %v1555_v12 }
 0x415   :  { %3386 = vmatpush3.msra.mxu0 %v1555_v12 }
 0x489   :  { %v4428_v45 = vpop.f32.mrf.mxu0 }
 0x48b   :  { %v4430_v41 = vpop.f32.mrf.mxu0 }
 0x48d   :  { %v3328_v11 = vpop.f32.mrf.mxu1 }
 0x48e   :  { %1473 = vrot.lane.b32.xlu1 %v3328_v11, %s3875_s26 }
 0x48f   :  { %v650_v18 = vpop.f32.mrf.mxu1 }
 0x490   :  { %1471 = vrot.lane.b32.xlu0 %v650_v18, %s3875_s26 }
 0x4b5   :  { %v3335_v33 = vpop.f32.mrf.mxu0 }
 0x4b6   :  { %1481 = vrot.lane.b32.xlu1 %v3335_v33, %s3897_s1 }
 0x4b7   :  { %v785_v62 = vpop.f32.mrf.mxu0 }
 0x4b8   :  { %1479 = vrot.lane.b32.xlu0 %v785_v62, %s3897_s1 }
 0x4b9   :  { %v3342_v50 = vpop.f32.mrf.mxu1 }
 0x4ba   :  { %1489 = vrot.lane.b32.xlu1 %v3342_v50, %s3898_s2 }
 0x4bb   :  { %v920_v6 = vpop.f32.mrf.mxu1 }
 0x4bc   :  { %1487 = vrot.lane.b32.xlu0 %v920_v6, %s3898_s2 }
 0x4bd   :  { %v3349_v51 = vpop.f32.mrf.mxu0 }
 0x4be   :  { %1497 = vrot.lane.b32.xlu1 %v3349_v51, %s3899_s24 }
 0x4bf   :  { %v1055_v60 = vpop.f32.mrf.mxu0 }
 0x4c0   :  { %1495 = vrot.lane.b32.xlu0 %v1055_v60, %s3899_s24  ;;  %v1564_v60 = vld [vmem:[#allocation14] sm:$0xff] }
 0x4c1   :  { %v3356_v61 = vpop.f32.mrf.mxu1 }
 0x4c2   :  { %1505 = vrot.lane.b32.xlu1 %v3356_v61, %s3900_s27  ;;  %v1563_v61 = vld [vmem:[#allocation13] sm:$0xff] }
 0x4c3   :  { %v1190_v21 = vpop.f32.mrf.mxu1 }
 0x4c4   :  { %1503 = vrot.lane.b32.xlu0 %v1190_v21, %s3900_s27 }
 0x4c5   :  { %v3363_v55 = vpop.f32.mrf.mxu0 }
 0x4c6   :  { %1513 = vrot.lane.b32.xlu1 %v3363_v55, %s3901_s19 }
 0x4c7   :  { %v1325_v52 = vpop.f32.mrf.mxu0 }
 0x4c8   :  { %1511 = vrot.lane.b32.xlu0 %v1325_v52, %s3901_s19 }
 0x4c9   :  { %v3370_v59 = vpop.f32.mrf.mxu1 }
 0x4ca   :  { %1521 = vrot.lane.b32.xlu1 %v3370_v59, %s3902_s20 }
 0x4cb   :  { %v1460_v13 = vpop.f32.mrf.mxu1 }
 0x4cc   :  { %1519 = vrot.lane.b32.xlu0 %v1460_v13, %s3902_s20 }
 0x500   :  { %v1474_v63 = vpop.permute.xlu1 %1473 }
 0x501   :  { %v1527_v58 = vsel %vm1525_vm9, %v4428_v45, %v1474_v63  ;;  %v3165_v45 = vld [vmem:[#allocation11] ss:$0 sm:$0xff] }
 0x502   :  { %v1472_v47 = vpop.permute.xlu0 %1471 }
 0x503   :  { %v1526_v57 = vsel %vm1525_vm9, %v4430_v41, %v1472_v47 }
 0x528   :  { %v1482_v28 = vpop.permute.xlu1 %1481 }
 0x529   :  { %v1529_v36 = vsel %vm153_vm0, %v1527_v58, %v1482_v28 }
 0x52a   :  { %v1480_v8 = vpop.permute.xlu0 %1479 }
 0x52b   :  { %v1528_v5 = vsel %vm153_vm0, %v1526_v57, %v1480_v8 }
 0x52c   :  { %v1490_v54 = vpop.permute.xlu1 %1489 }
 0x52d   :  { %v1532_v34 = vsel %vm1530_vm10, %v1529_v36, %v1490_v54 }
 0x52e   :  { %v1488_v37 = vpop.permute.xlu0 %1487 }
 0x52f   :  { %v1531_v0 = vsel %vm1530_vm10, %v1528_v5, %v1488_v37 }
 0x530   :  { %v1498_v32 = vpop.permute.xlu1 %1497 }
 0x531   :  { %v1535_v46 = vsel %vm1533_vm11, %v1532_v34, %v1498_v32 }
 0x532   :  { %v1496_v38 = vpop.permute.xlu0 %1495 }
 0x533   :  { %v1534_v11 = vsel %vm1533_vm11, %v1531_v0, %v1496_v38 }
 0x534   :  { %v1506_v53 = vpop.permute.xlu1 %1505 }
 0x535   :  { %v1538_v48 = vsel %vm1536_vm13, %v1535_v46, %v1506_v53 }
 0x536   :  { %v1504_v3 = vpop.permute.xlu0 %1503 }
 0x537   :  { %v1537_v41 = vsel %vm1536_vm13, %v1534_v11, %v1504_v3 }
 0x538   :  { %v1514_v39 = vpop.permute.xlu1 %1513 }
 0x539   :  { %v1541_v18 = vsel %vm1539_vm14, %v1538_v48, %v1514_v39 }
 0x53a   :  { %v1512_v43 = vpop.permute.xlu0 %1511 }
 0x53b   :  { %v1540_v62 = vsel %vm1539_vm14, %v1537_v41, %v1512_v43 }
 0x53c   :  { %v1522_v33 = vpop.permute.xlu1 %1521 }
 0x53d   :  { %v1544_v35 = vsel %vm1542_vm15, %v1541_v18, %v1522_v33 }
 0x53e   :  { %v1520_v2 = vpop.permute.xlu0 %1519  ;;  %v1552_v50 = vadd.f32 %v3165_v45, %v1544_v35 }
 0x53f   :  { %v1543_v1 = vsel %vm1542_vm15, %v1540_v62, %v1520_v2 }
 0x540   :  { %v1551_v6 = vadd.f32 %v3165_v45, %v1543_v1  ;;  %v1554_v51 = vmax.f32 %v1552_v50, 0.0 }
 0x542   :  { %v1553_v25 = vmax.f32 %v1551_v6, 0.0 }
 0x544   :  { %3387 = vmatprep.mubr.msk.f32.mxu0 %vm235_vm2, %v1553_v25 }
 0x545   :  { %3388 = vmatmul.mubr.msk.f32.vlgmr.msra.gmra.mxu0 %vm235_vm2, %v1554_v51 }
 0x605   :  { %v4486_v26 = vpop.f32.mrf.mxu0 }
 0x606   :  { %3391 = vmatpush3.xpose.msk.msra.mxu1 %vm235_vm2, %v4486_v26 }
 0x607   :  { %3392 = vmatprep.subr.mxu1 %v3880_v4  ;;  %v4491_v7 = vpop.f32.mrf.mxu0 }
 0x60a   :  { %3393 = vmatpush3.xpose.msk.msra.mxu1 %vm235_vm2, %v4491_v7 }
 0x60b   :  { %3397 = vmatprep.subr.msk.mxu1 %vm235_vm2, %v1564_v60 }
 0x60d   :  { %3395 = vmatmul.mubr.msk.f32.vlgmr.msra.gmra.mxu1 %vm235_vm2, %v1563_v61 }
 0x60e   :  { %3398 = vmatpush3.xpose.msk.msra.mxu1 %vm235_vm2, %v1564_v60  ;;  %3399 = vmatprep.mubr.msk.f32.mxu1 %vm235_vm2, %v4491_v7 }
 0x60f   :  { %3402 = vmatprep.subr.mxu1 %v4486_v26 }
 0x611   :  { %3400 = vmatmul.mubr.msk.f32.vlgmr.msra.gmra.mxu1 %vm235_vm2, %v4486_v26 }
 0x612   :  { %3403 = vmatpush3.msra.mxu1 %v4486_v26 }
 0x613   :  { %3404 = vmatprep.subr.mxu1 %v4491_v7 }
 0x614   :  { %3405 = vmatpush3.msra.mxu1 %v4491_v7 }
 0x6cd   :  { %v4506_v44 = vpop.f32.mrf.mxu1 }
 0x6ce   :  { %v4548_v52 = vrot.slane %v4506_v44, %v669_v30  ;;  %v2621_v62 = vrot.slane %v4506_v44, %v1209_v49  ;;  %v2756_v49 = vrot.slane %v4506_v44, %v1344_v29 }
 0x6cf   :  { %v3396_v12 = vpop.f32.mrf.mxu1 }
 0x6d1   :  { %v3401_v21 = vpop.f32.mrf.mxu1 }
 0x6d2   :  { %1940 = vperm.xlu0 %3535, %v3401_v21   ;;  %1811 = vperm.xlu1 %3534, %v3401_v21  }
 0x6d3   :  { %v1795_v55 = vpop.f32.mrf.mxu1 }
 0x6d6   :  { %3538 = vset.pattern.permute.xlu0 %v3886_v16  ;;  %3536 = vset.pattern.permute.xlu1 %v3884_v14 }
 0x6d7   :  { %2345 = vperm.xlu0 %3538, %v3401_v21   ;;  %2075 = vperm.xlu1 %3536, %v3401_v21  }
 0x6db   :  { %3541 = vset.pattern.permute.xlu0 %v3883_v10  ;;  %3537 = vset.pattern.permute.xlu1 %v3885_v15  ;;  %v1817_v10 = vrot.slane %v4506_v44, %v405_v24  ;;  %v4553_v24 = vrot.slane %v4506_v44, %v939_v42  ;;  %v2216_v42 = vrot.slane %v4506_v44, %v804_v31 }
 0x6dc   :  { %2210 = vperm.xlu1 %3537, %v3401_v21   ;;  %1806 = vperm.xlu0 %3541, %v1795_v55   ;;  %v4579_v31 = vrot.slane %v4506_v44, %v1074_v56 }
 0x6e0   :  { %3539 = vset.pattern.permute.xlu1 %v3888_v19  ;;  %3544 = vset.pattern.permute.xlu0 %v3885_v15 }
 0x6e1   :  { %2480 = vperm.xlu1 %3539, %v3401_v21   ;;  %2206 = vperm.xlu0 %3544, %v1795_v55  }
 0x6e5   :  { %3540 = vset.pattern.permute.xlu1 %v3887_v17  ;;  %3547 = vset.pattern.permute.xlu0 %v3887_v17 }
 0x6e6   :  { %2615 = vperm.xlu1 %3540, %v3401_v21   ;;  %2611 = vperm.xlu0 %3547, %v1795_v55  }
 0x6ea   :  { %3542 = vset.pattern.permute.xlu1 %v3882_v9  ;;  %3549 = vset.pattern.permute.xlu0 %v3889_v20  ;;  %v4539_v9 = vrot.slane %v4506_v44, %v534_v23 }
 0x6eb   :  { %1936 = vperm.xlu1 %3542, %v1795_v55   ;;  %2750 = vperm.xlu0 %3549, %v3401_v21  }
 0x6ef   :  { %3543 = vset.pattern.permute.xlu1 %v3884_v14  ;;  %1983 = vrot.lane.b32.xlu0 %v4491_v7, %s3890_s0 }
 0x6f0   :  { %2071 = vperm.xlu1 %3543, %v1795_v55  }
 0x6f3   :  { %2118 = vrot.lane.b32.xlu0 %v4491_v7, %s3891_s29 }
 0x6f4   :  { %3545 = vset.pattern.permute.xlu1 %v3886_v16 }
 0x6f5   :  { %2341 = vperm.xlu1 %3545, %v1795_v55  }
 0x6f9   :  { %3546 = vset.pattern.permute.xlu1 %v3888_v19 }
 0x6fa   :  { %2476 = vperm.xlu1 %3546, %v1795_v55  }
 0x6fe   :  { %3548 = vset.pattern.permute.xlu1 %v3889_v20 }
 0x6ff   :  { %2746 = vperm.xlu1 %3548, %v1795_v55  }
 0x703   :  { %1985 = vrot.lane.b32.xlu1 %v4486_v26, %s3890_s0 }
 0x707   :  { %2120 = vrot.lane.b32.xlu1 %v4486_v26, %s3891_s29 }
 0x70b   :  { %2255 = vrot.lane.b32.xlu1 %v4486_v26, %s3892_s30 }
 0x70f   :  { %2253 = vrot.lane.b32.xlu1 %v4491_v7, %s3892_s30 }
 0x713   :  { %2525 = vrot.lane.b32.xlu1 %v4486_v26, %s3893_s14 }
 0x74d   :  { %v1941_v14 = vpop.permute.xlu0 %1940  ;;  %v1812_v15 = vpop.permute.xlu1 %1811 }
 0x74e   :  { %v1948_v16 = vadd.f32 %v4539_v9, %v1941_v14  ;;  %v1819_v17 = vadd.f32 %v1817_v10, %v1812_v15 }
 0x750   :  { %v1952_v19 = vmul.f32 0.2, %v1948_v16  ;;  %v1823_v20 = vmul.f32 0.2, %v1819_v17  ;;  %vm1821_vm4 = vcmp.gt.f32.partialorder %v1819_v17, 0.0  ;;  %vm1950_vm5 = vcmp.gt.f32.partialorder %v1948_v16, 0.0 }
 0x752   :  { %v2346_v23 = vpop.permute.xlu0 %2345  ;;  %v2076_v59 = vpop.permute.xlu1 %2075  ;;  %v1825_v13 = vsel %vm1821_vm4, %v1819_v17, %v1823_v20  ;;  %v1954_v63 = vsel %vm1950_vm5, %v1948_v16, %v1952_v19 }
 0x753   :  { %v2083_v47 = vadd.f32 %v4548_v52, %v2076_v59  ;;  %v4558_v28 = vsel %vm145_vm3, %v1825_v13, -1e+30  ;;  %v2353_v30 = vadd.f32 %v4553_v24, %v2346_v23  ;;  %v4565_v37 = vsel %vm145_vm3, %v1954_v63, -1e+30 }
 0x754   :  { %v1831_v8 = vsel %vm153_vm0, %v4558_v28, -inf  ;;  %v1960_v36 = vsel %vm153_vm0, %v4565_v37, -inf }
 0x755   :  { %v2087_v54 = vmul.f32 0.2, %v2083_v47  ;;  %1832 = vmax.xlane.f32.xlu0 %v1831_v8  ;;  %vm2085_vm6 = vcmp.gt.f32.partialorder %v2083_v47, 0.0  ;;  %v2357_v39 = vmul.f32 0.2, %v2353_v30  ;;  %vm2355_vm4 = vcmp.gt.f32.partialorder %v2353_v30, 0.0 }
 0x757   :  { %v2211_v32 = vpop.permute.xlu1 %2210  ;;  %v1807_v38 = vpop.permute.xlu0 %1806  ;;  %v2089_v53 = vsel %vm2085_vm6, %v2083_v47, %v2087_v54  ;;  %v2359_v41 = vsel %vm2355_vm4, %v2353_v30, %v2357_v39 }
 0x758   :  { %v2218_v3 = vadd.f32 %v2216_v42, %v2211_v32  ;;  %v1818_v58 = vadd.f32 %v1817_v10, %v1807_v38  ;;  %v4574_v57 = vsel %vm145_vm3, %v2089_v53, -1e+30  ;;  %v4601_v6 = vsel %vm145_vm3, %v2359_v41, -1e+30 }
 0x759   :  { %1961 = vmax.xlane.f32.xlu0 %v1960_v36  ;;  %v2095_v0 = vsel %vm153_vm0, %v4574_v57, -inf  ;;  %v2365_v61 = vsel %vm153_vm0, %v4601_v6, -inf }
 0x75a   :  { %v2222_v34 = vmul.f32 0.2, %v2218_v3  ;;  %vm1820_vm7 = vcmp.gt.f32.partialorder %v1818_v58, 0.0  ;;  %v1822_v5 = vmul.f32 0.2, %v1818_v58  ;;  %vm2220_vm8 = vcmp.gt.f32.partialorder %v2218_v3, 0.0 }
 0x75c   :  { %v2481_v46 = vpop.permute.xlu1 %2480  ;;  %v2207_v43 = vpop.permute.xlu0 %2206  ;;  %v1824_v48 = vsel %vm1820_vm7, %v1818_v58, %v1822_v5  ;;  %v2224_v11 = vsel %vm2220_vm8, %v2218_v3, %v2222_v34 }
 0x75d   :  { %v2488_v18 = vadd.f32 %v4579_v31, %v2481_v46  ;;  %2096 = vmax.xlane.f32.xlu0 %v2095_v0  ;;  %v4586_v45 = vsel %vm144_vm12, %v1824_v48, -1e+30  ;;  %v4590_v33 = vsel %vm145_vm3, %v2224_v11, -1e+30  ;;  %v2217_v16 = vadd.f32 %v2216_v42, %v2207_v43 }
 0x75e   :  { %v1828_v56 = vsel %vm153_vm0, %v4586_v45, -inf  ;;  %v2230_v2 = vsel %vm153_vm0, %v4590_v33, -inf }
 0x75f   :  { %vm2490_vm5 = vcmp.gt.f32.partialorder %v2488_v18, 0.0  ;;  %v2492_v35 = vmul.f32 0.2, %v2488_v18  ;;  %1829 = vmax.xlane.f32.xlu1 %v1828_v56  ;;  %v2221_v59 = vmul.f32 0.2, %v2217_v16  ;;  %vm2219_vm4 = vcmp.gt.f32.partialorder %v2217_v16, 0.0 }
 0x761   :  { %v2616_v50 = vpop.permute.xlu1 %2615  ;;  %2231 = vmax.xlane.f32.xlu0 %v2230_v2  ;;  %v2612_v1 = vpop.permute.xlu0 %2611  ;;  %v2494_v51 = vsel %vm2490_vm5, %v2488_v18, %v2492_v35  ;;  %v2223_v32 = vsel %vm2219_vm4, %v2217_v16, %v2221_v59 }
 0x762   :  { %v2623_v25 = vadd.f32 %v2621_v62, %v2616_v50  ;;  %v4610_v12 = vsel %vm145_vm3, %v2494_v51, -1e+30  ;;  %v4643_v36 = vsel %vm144_vm12, %v2223_v32, -1e+30  ;;  %v2622_v39 = vadd.f32 %v2621_v62, %v2612_v1 }
 0x763   :  { %v2500_v17 = vsel %vm153_vm0, %v4610_v12, -inf  ;;  %v2227_v46 = vsel %vm153_vm0, %v4643_v36, -inf }
 0x764   :  { %vm2625_vm6 = vcmp.gt.f32.partialorder %v2623_v25, 0.0  ;;  %v2627_v60 = vmul.f32 0.2, %v2623_v25  ;;  %v2626_v0 = vmul.f32 0.2, %v2622_v39 }
 0x765   :  { %2366 = vmax.xlane.f32.xlu0 %v2365_v61 }
 0x766   :  { %v1937_v21 = vpop.permute.xlu1 %1936  ;;  %v2751_v55 = vpop.permute.xlu0 %2750  ;;  %v2629_v10 = vsel %vm2625_vm6, %v2623_v25, %v2627_v60 }
 0x767   :  { %v1947_v14 = vadd.f32 %v4539_v9, %v1937_v21  ;;  %v2758_v15 = vadd.f32 %v2756_v49, %v2751_v55  ;;  %v4617_v19 = vsel %vm145_vm3, %v2629_v10, -1e+30 }
 0x768   :  { %v2635_v13 = vsel %vm153_vm0, %v4617_v19, -inf }
 0x769   :  { %vm1949_vm7 = vcmp.gt.f32.partialorder %v1947_v14, 0.0  ;;  %v1951_v22 = vmul.f32 0.2, %v1947_v14  ;;  %vm2760_vm8 = vcmp.gt.f32.partialorder %v2758_v15, 0.0  ;;  %v2762_v29 = vmul.f32 0.2, %v2758_v15  ;;  %2501 = vmax.xlane.f32.xlu0 %v2500_v17 }
 0x76a   :  { %v1984_v25 = vpop.permute.xlu0 %1983 }
 0x76b   :  { %v2072_v44 = vpop.permute.xlu1 %2071  ;;  %v1953_v20 = vsel %vm1949_vm7, %v1947_v14, %v1951_v22  ;;  %v2764_v23 = vsel %vm2760_vm8, %v2758_v15, %v2762_v29  ;;  %vm2624_vm8 = vcmp.gt.f32.partialorder %v2622_v39, 0.0 }
 0x76c   :  { %v2082_v9 = vadd.f32 %v4548_v52, %v2072_v44  ;;  %v4624_v63 = vsel %vm144_vm12, %v1953_v20, -1e+30  ;;  %v4630_v8 = vsel %vm145_vm3, %v2764_v23, -1e+30  ;;  %v2628_v35 = vsel %vm2624_vm8, %v2622_v39, %v2626_v0 }
 0x76d   :  { %2636 = vmax.xlane.f32.xlu0 %v2635_v13  ;;  %v1957_v47 = vsel %vm153_vm0, %v4624_v63, -inf  ;;  %v2770_v54 = vsel %vm153_vm0, %v4630_v8, -inf  ;;  %v4662_v1 = vsel %vm144_vm12, %v2628_v35, -1e+30 }
 0x76e   :  { %vm2084_vm5 = vcmp.gt.f32.partialorder %v2082_v9, 0.0  ;;  %v2086_v30 = vmul.f32 0.2, %v2082_v9  ;;  %1958 = vmax.xlane.f32.xlu1 %v1957_v47  ;;  %v2632_v61 = vsel %vm153_vm0, %v4662_v1, -inf  ;;  %v4688_v10 = vpop.permute.xlu0 %2118 }
 0x770   :  { %v2342_v52 = vpop.permute.xlu1 %2341  ;;  %v2088_v42 = vsel %vm2084_vm5, %v2082_v9, %v2086_v30 }
 0x771   :  { %v2352_v38 = vadd.f32 %v4553_v24, %v2342_v52  ;;  %2771 = vmax.xlane.f32.xlu0 %v2770_v54  ;;  %v4637_v53 = vsel %vm144_vm12, %v2088_v42, -1e+30 }
 0x772   :  { %v2092_v3 = vsel %vm153_vm0, %v4637_v53, -inf }
 0x773   :  { %vm2354_vm6 = vcmp.gt.f32.partialorder %v2352_v38, 0.0  ;;  %v2356_v58 = vmul.f32 0.2, %v2352_v38  ;;  %2093 = vmax.xlane.f32.xlu1 %v2092_v3 }
 0x775   :  { %v2477_v34 = vpop.permute.xlu1 %2476  ;;  %v2358_v5 = vsel %vm2354_vm6, %v2352_v38, %v2356_v58 }
 0x776   :  { %v2487_v24 = vadd.f32 %v4579_v31, %v2477_v34  ;;  %v4650_v43 = vsel %vm144_vm12, %v2358_v5, -1e+30 }
 0x777   :  { %2228 = vmax.xlane.f32.xlu1 %v2227_v46  ;;  %v2362_v18 = vsel %vm153_vm0, %v4650_v43, -inf }
 0x778   :  { %vm2489_vm7 = vcmp.gt.f32.partialorder %v2487_v24, 0.0  ;;  %v2491_v48 = vmul.f32 0.2, %v2487_v24 }
 0x77a   :  { %v2747_v11 = vpop.permute.xlu1 %2746  ;;  %v2493_v56 = vsel %vm2489_vm7, %v2487_v24, %v2491_v48 }
 0x77b   :  { %v2757_v41 = vadd.f32 %v2756_v49, %v2747_v11  ;;  %2363 = vmax.xlane.f32.xlu1 %v2362_v18  ;;  %v4656_v31 = vsel %vm144_vm12, %v2493_v56, -1e+30 }
 0x77c   :  { %v2497_v50 = vsel %vm153_vm0, %v4656_v31, -inf }
 0x77d   :  { %vm2759_vm4 = vcmp.gt.f32.partialorder %v2757_v41, 0.0  ;;  %v2761_v62 = vmul.f32 0.2, %v2757_v41 }
 0x77e   :  { %v1986_v2 = vpop.permute.xlu1 %1985 }
 0x77f   :  { %3409 = vmatprep.subr.mxu0 %v1986_v2  ;;  %2498 = vmax.xlane.f32.xlu1 %v2497_v50  ;;  %v2763_v51 = vsel %vm2759_vm4, %v2757_v41, %v2761_v62 }
 0x780   :  { %3410 = vmatpush3.msra.mxu0 %v1986_v2  ;;  %v4671_v49 = vsel %vm144_vm12, %v2763_v51, -1e+30 }
 0x781   :  { %3411 = vmatprep.subr.mxu0 %v1984_v25  ;;  %v2767_v55 = vsel %vm153_vm0, %v4671_v49, -inf }
 0x782   :  { %v4664_v60 = vpop.permute.xlu1 %2120  ;;  %3412 = vmatpush3.msra.mxu0 %v1984_v25 }
 0x783   :  { %3416 = vmatprep.subr.mxu1 %v4664_v60  ;;  %2633 = vmax.xlane.f32.xlu1 %v2632_v61 }
 0x786   :  { %v4673_v21 = vpop.permute.xlu1 %2255 }
 0x787   :  { %2768 = vmax.xlane.f32.xlu1 %v2767_v55  ;;  %2390 = vrot.lane.b32.xlu0 %v4486_v26, %s3894_s15 }
 0x788   :  { %3423 = vmatprep.subr.mxu0 %v4673_v21 }
 0x78a   :  { %v4690_v14 = vpop.permute.xlu1 %2253 }
 0x78b   :  { %2388 = vrot.lane.b32.xlu0 %v4491_v7, %s3894_s15 }
 0x78e   :  { %v4694_v44 = vpop.permute.xlu1 %2525 }
 0x78f   :  { %2660 = vrot.lane.b32.xlu0 %v4486_v26, %s3895_s6 }
 0x798   :  { %2523 = vrot.lane.b32.xlu1 %v4491_v7, %s3893_s14 }
 0x79c   :  { %2795 = vrot.lane.b32.xlu1 %v4486_v26, %s3896_s16 }
 0x7de   :  { %v1833_v15 = vpop.xlane.xlu0 %1832 }
 0x7df   :  { %v1835_v16 = vsub.f32 %v4558_v28, %v1833_v15 }
 0x7e1   :  { %v1838_v17 = vmul.f32 1.442695, %v1835_v16 }
 0x7e2   :  { %v1962_v22 = vpop.xlane.xlu0 %1961 }
 0x7e3   :  { %3614 = vpow2.f32 %v1838_v17  ;;  %v1964_v29 = vsub.f32 %v4565_v37, %v1962_v22 }
 0x7e5   :  { %v1967_v20 = vmul.f32 1.442695, %v1964_v29 }
 0x7e6   :  { %v2097_v23 = vpop.xlane.xlu0 %2096 }
 0x7e7   :  { %3616 = vpow2.f32 %v1967_v20  ;;  %v2099_v59 = vsub.f32 %v4574_v57, %v2097_v23 }
 0x7e8   :  { %v1830_v26 = vpop.xlane.xlu1 %1829 }
 0x7e9   :  { %v2102_v9 = vmul.f32 1.442695, %v2099_v59  ;;  %v1834_v13 = vsub.f32 %v4586_v45, %v1830_v26 }
 0x7ea   :  { %v2232_v47 = vpop.xlane.xlu0 %2231 }
 0x7eb   :  { %3618 = vpow2.f32 %v2102_v9  ;;  %v1836_v30 = vmul.f32 1.442695, %v1834_v13  ;;  %v2234_v28 = vsub.f32 %v4590_v33, %v2232_v47 }
 0x7ed   :  { %3620 = vpow2.f32 %v1836_v30  ;;  %v2237_v52 = vmul.f32 1.442695, %v2234_v28 }
 0x7ee   :  { %v2367_v54 = vpop.xlane.xlu0 %2366 }
 0x7ef   :  { %3622 = vpow2.f32 %v2237_v52  ;;  %v2369_v37 = vsub.f32 %v4601_v6, %v2367_v54 }
 0x7f0   :  { %v3615_v42 = vpop.eup %3614 }
 0x7f1   :  { %v2372_v32 = vmul.f32 1.442695, %v2369_v37  ;;  %v4702_v57 = vsel %vm145_vm3, %v3615_v42, 0.0 }
 0x7f2   :  { %v2502_v38 = vpop.xlane.xlu0 %2501  ;;  %v1845_v45 = vsel %vm153_vm0, %v4702_v57, 0.0 }
 0x7f3   :  { %3624 = vpow2.f32 %v2372_v32  ;;  %v2504_v3 = vsub.f32 %v4610_v12, %v2502_v38  ;;  %1846 = vadd.xlane.f32.xlu0 %v1845_v45 }
 0x7f4   :  { %v3617_v33 = vpop.eup %3616 }
 0x7f5   :  { %v2507_v58 = vmul.f32 1.442695, %v2504_v3  ;;  %v4709_v39 = vsel %vm145_vm3, %v3617_v33, 0.0 }
 0x7f6   :  { %v2637_v6 = vpop.xlane.xlu0 %2636  ;;  %v1974_v34 = vsel %vm153_vm0, %v4709_v39, 0.0 }
 0x7f7   :  { %3626 = vpow2.f32 %v2507_v58  ;;  %v2639_v5 = vsub.f32 %v4617_v19, %v2637_v6  ;;  %v1959_v24 = vpop.xlane.xlu1 %1958  ;;  %1975 = vadd.xlane.f32.xlu0 %v1974_v34 }
 0x7f8   :  { %v3619_v46 = vpop.eup %3618  ;;  %v1963_v0 = vsub.f32 %v4624_v63, %v1959_v24 }
 0x7f9   :  { %v2642_v12 = vmul.f32 1.442695, %v2639_v5  ;;  %v4717_v48 = vsel %vm145_vm3, %v3619_v46, 0.0 }
 0x7fa   :  { %v3621_v11 = vpop.eup %3620  ;;  %v1965_v18 = vmul.f32 1.442695, %v1963_v0  ;;  %v2772_v56 = vpop.xlane.xlu0 %2771  ;;  %v2109_v41 = vsel %vm153_vm0, %v4717_v48, 0.0 }
 0x7fb   :  { %3628 = vpow2.f32 %v2642_v12  ;;  %v2774_v35 = vsub.f32 %v4630_v8, %v2772_v56  ;;  %2110 = vadd.xlane.f32.xlu0 %v2109_v41  ;;  %v4724_v19 = vsel %vm144_vm12, %v3621_v11, 0.0 }
 0x7fc   :  { %v3623_v63 = vpop.eup %3622  ;;  %3630 = vpow2.f32 %v1965_v18  ;;  %v2094_v62 = vpop.xlane.xlu1 %2093  ;;  %v1842_v2 = vsel %vm153_vm0, %v4724_v19, 0.0 }
 0x7fd   :  { %v2777_v50 = vmul.f32 1.442695, %v2774_v35  ;;  %v2098_v25 = vsub.f32 %v4637_v53, %v2094_v62  ;;  %1843 = vadd.xlane.f32.xlu1 %v1842_v2  ;;  %v4731_v51 = vsel %vm145_vm3, %v3623_v63, 0.0 }
 0x7fe   :  { %v2244_v8 = vsel %vm153_vm0, %v4731_v51, 0.0 }
 0x7ff   :  { %3632 = vpow2.f32 %v2777_v50  ;;  %v2100_v61 = vmul.f32 1.442695, %v2098_v25  ;;  %2245 = vadd.xlane.f32.xlu0 %v2244_v8  ;;  %v4810_v25 = vpop.permute.xlu0 %2390 }
 0x800   :  { %v3625_v55 = vpop.eup %3624  ;;  %v2229_v15 = vpop.xlane.xlu1 %2228 }
 0x801   :  { %3634 = vpow2.f32 %v2100_v61  ;;  %v2233_v16 = vsub.f32 %v4643_v36, %v2229_v15  ;;  %v4738_v17 = vsel %vm145_vm3, %v3625_v55, 0.0 }
 0x802   :  { %v2379_v53 = vsel %vm153_vm0, %v4738_v17, 0.0 }
 0x803   :  { %v2235_v22 = vmul.f32 1.442695, %v2233_v16  ;;  %2380 = vadd.xlane.f32.xlu0 %v2379_v53  ;;  %v4812_v8 = vpop.permute.xlu0 %2388 }
 0x804   :  { %v3627_v29 = vpop.eup %3626  ;;  %v2364_v20 = vpop.xlane.xlu1 %2363 }
 0x805   :  { %3636 = vpow2.f32 %v2235_v22  ;;  %v2368_v23 = vsub.f32 %v4650_v43, %v2364_v20  ;;  %v4745_v59 = vsel %vm145_vm3, %v3627_v29, 0.0 }
 0x806   :  { %v2514_v36 = vsel %vm153_vm0, %v4745_v59, 0.0 }
 0x807   :  { %v2370_v26 = vmul.f32 1.442695, %v2368_v23  ;;  %2515 = vadd.xlane.f32.xlu0 %v2514_v36  ;;  %v4814_v61 = vpop.permute.xlu0 %2660 }
 0x808   :  { %v3629_v9 = vpop.eup %3628  ;;  %v2499_v13 = vpop.xlane.xlu1 %2498 }
 0x809   :  { %v3631_v47 = vpop.eup %3630  ;;  %3638 = vpow2.f32 %v2370_v26  ;;  %v2503_v30 = vsub.f32 %v4656_v31, %v2499_v13  ;;  %v4752_v28 = vsel %vm145_vm3, %v3629_v9, 0.0 }
 0x80a   :  { %v2649_v43 = vsel %vm153_vm0, %v4752_v28, 0.0  ;;  %v4758_v52 = vsel %vm144_vm12, %v3631_v47, 0.0 }
 0x80b   :  { %v2505_v54 = vmul.f32 1.442695, %v2503_v30  ;;  %2650 = vadd.xlane.f32.xlu0 %v2649_v43  ;;  %v1971_v37 = vsel %vm153_vm0, %v4758_v52, 0.0 }
 0x80c   :  { %v3633_v42 = vpop.eup %3632  ;;  %1972 = vadd.xlane.f32.xlu1 %v1971_v37  ;;  %v2634_v32 = vpop.xlane.xlu1 %2633 }
 0x80d   :  { %3640 = vpow2.f32 %v2505_v54  ;;  %v2638_v31 = vsub.f32 %v4662_v1, %v2634_v32  ;;  %v4765_v38 = vsel %vm145_vm3, %v3633_v42, 0.0 }
 0x80e   :  { %v3635_v45 = vpop.eup %3634  ;;  %v2784_v3 = vsel %vm153_vm0, %v4765_v38, 0.0 }
 0x80f   :  { %v2640_v33 = vmul.f32 1.442695, %v2638_v31  ;;  %2785 = vadd.xlane.f32.xlu0 %v2784_v3  ;;  %v4771_v58 = vsel %vm144_vm12, %v3635_v45, 0.0 }
 0x810   :  { %v2769_v6 = vpop.xlane.xlu1 %2768  ;;  %v2106_v34 = vsel %vm153_vm0, %v4771_v58, 0.0 }
 0x811   :  { %3642 = vpow2.f32 %v2640_v33  ;;  %v2773_v1 = vsub.f32 %v4671_v49, %v2769_v6  ;;  %2107 = vadd.xlane.f32.xlu1 %v2106_v34 }
 0x812   :  { %v3637_v27 = vpop.eup %3636 }
 0x813   :  { %v2775_v5 = vmul.f32 1.442695, %v2773_v1  ;;  %v4778_v24 = vsel %vm144_vm12, %v3637_v27, 0.0 }
 0x814   :  { %v2241_v46 = vsel %vm153_vm0, %v4778_v24, 0.0  ;;  %v4816_v55 = vpop.permute.xlu1 %2523 }
 0x815   :  { %3644 = vpow2.f32 %v2775_v5  ;;  %2242 = vadd.xlane.f32.xlu1 %v2241_v46 }
 0x816   :  { %v3639_v0 = vpop.eup %3638 }
 0x817   :  { %v4784_v12 = vsel %vm144_vm12, %v3639_v0, 0.0 }
 0x818   :  { %v2376_v49 = vsel %vm153_vm0, %v4784_v12, 0.0  ;;  %v4818_v15 = vpop.permute.xlu1 %2795 }
 0x819   :  { %2377 = vadd.xlane.f32.xlu1 %v2376_v49 }
 0x81a   :  { %v3641_v11 = vpop.eup %3640 }
 0x81b   :  { %v4790_v18 = vsel %vm144_vm12, %v3641_v11, 0.0 }
 0x81c   :  { %v2511_v56 = vsel %vm153_vm0, %v4790_v18, 0.0 }
 0x81d   :  { %2512 = vadd.xlane.f32.xlu1 %v2511_v56 }
 0x81e   :  { %v3643_v41 = vpop.eup %3642 }
 0x81f   :  { %v4796_v35 = vsel %vm144_vm12, %v3643_v41, 0.0 }
 0x820   :  { %v2646_v63 = vsel %vm153_vm0, %v4796_v35, 0.0 }
 0x821   :  { %2647 = vadd.xlane.f32.xlu1 %v2646_v63 }
 0x822   :  { %v3645_v62 = vpop.eup %3644 }
 0x823   :  { %v4802_v2 = vsel %vm144_vm12, %v3645_v62, 0.0 }
 0x824   :  { %v2781_v50 = vsel %vm153_vm0, %v4802_v2, 0.0 }
 0x825   :  { %2782 = vadd.xlane.f32.xlu1 %v2781_v50  ;;  %2658 = vrot.lane.b32.xlu0 %v4491_v7, %s3895_s6 }
 0x836   :  { %2793 = vrot.lane.b32.xlu1 %v4491_v7, %s3896_s16 }
 0x87c   :  { %v1847_v40 = vpop.xlane.xlu0 %1846 }
 0x87d   :  { %v1849_v16 = vmax.f32 %v1847_v40, 1e-30 }
 0x87f   :  { %3646 = vrcp.f32 %v1849_v16 }
 0x880   :  { %v1976_v53 = vpop.xlane.xlu0 %1975 }
 0x881   :  { %v1978_v7 = vmax.f32 %v1976_v53, 1e-30 }
 0x884   :  { %v2111_v20 = vpop.xlane.xlu0 %2110 }
 0x885   :  { %v2113_v43 = vmax.f32 %v2111_v20, 1e-30 }
 0x886   :  { %v1844_v22 = vpop.xlane.xlu1 %1843 }
 0x887   :  { %v1848_v29 = vmax.f32 %v1844_v22, 1e-30 }
 0x888   :  { %v2246_v23 = vpop.xlane.xlu0 %2245 }
 0x889   :  { %3648 = vrcp.f32 %v1848_v29  ;;  %v2248_v32 = vmax.f32 %v2246_v23, 1e-30 }
 0x88a   :  { %3650 = vrcp.f32 %v1978_v7 }
 0x88c   :  { %v3647_v36 = vpop.eup %3646  ;;  %v2381_v47 = vpop.xlane.xlu0 %2380 }
 0x88d   :  { %v1853_v54 = vmul.f32 %v3647_v36, %v4702_v57  ;;  %v2383_v45 = vmax.f32 %v2381_v47, 1e-30 }
 0x890   :  { %v2516_v31 = vpop.xlane.xlu0 %2515 }
 0x894   :  { %v2651_v33 = vpop.xlane.xlu0 %2650 }
 0x895   :  { %v1973_v26 = vpop.xlane.xlu1 %1972  ;;  %v2653_v0 = vmax.f32 %v2651_v33, 1e-30  ;;  %v3034_v33 = vld [vmem:[%s4961_s11 + $0x10] sm:$0xff] }
 0x896   :  { %v3649_v9 = vpop.eup %3648  ;;  %v1977_v13 = vmax.f32 %v1973_v26, 1e-30 }
 0x897   :  { %v1851_v30 = vmul.f32 %v3649_v9, %v4724_v19  ;;  %v3651_v34 = vpop.eup %3650 }
 0x898   :  { %3652 = vrcp.f32 %v1977_v13  ;;  %v2786_v11 = vpop.xlane.xlu0 %2785 }
 0x899   :  { %3406 = vmatprep.mubr.msk.f32.mxu1 %vm153_vm0, %v1851_v30  ;;  %3654 = vrcp.f32 %v2113_v43 }
 0x89a   :  { %v2108_v37 = vpop.xlane.xlu1 %2107  ;;  %3407 = vmatmul.mubr.msk.f32.vlgmr.msra.gmra.mxu1 %vm153_vm0, %v1853_v54 }
 0x89b   :  { %v2112_v42 = vmax.f32 %v2108_v37, 1e-30  ;;  %3417 = vmatpush3.msra.mxu1 %v4664_v60  ;;  %v2518_v60 = vmax.f32 %v2516_v31, 1e-30  ;;  %v3039_v37 = vld [vmem:[%s4961_s11 + $0x38] sm:$0xff]  ;;  %v3037_v31 = vld [vmem:[%s4961_s11 + $0x28] sm:$0xff] }
 0x89c   :  { %3418 = vmatprep.subr.mxu1 %v4688_v10  ;;  %v2659_v22 = vpop.permute.xlu0 %2658 }
 0x89d   :  { %3656 = vrcp.f32 %v2112_v42  ;;  %3419 = vmatpush3.msra.mxu1 %v4688_v10  ;;  %v1982_v10 = vmul.f32 %v3651_v34, %v4709_v39  ;;  %v2788_v39 = vmax.f32 %v2786_v11, 1e-30  ;;  %v3038_v42 = vld [vmem:[%s4961_s11 + $0x30] sm:$0xff] }
 0x89e   :  { %3430 = vmatprep.subr.mxu1 %v4810_v25  ;;  %v2243_v19 = vpop.xlane.xlu1 %2242  ;;  %3658 = vrcp.f32 %v2248_v32 }
 0x89f   :  { %v2247_v57 = vmax.f32 %v2243_v19, 1e-30 }
 0x8a1   :  { %3660 = vrcp.f32 %v2247_v57  ;;  %v3036_v57 = vld [vmem:[%s4961_s11 + $0x20] sm:$0xff] }
 0x8a2   :  { %v2378_v3 = vpop.xlane.xlu1 %2377  ;;  %3662 = vrcp.f32 %v2383_v45  ;;  %v3035_v45 = vld [vmem:[%s4961_s11 + $0x18] sm:$0xff] }
 0x8a3   :  { %v2382_v6 = vmax.f32 %v2378_v3, 1e-30 }
 0x8a5   :  { %v3653_v1 = vpop.eup %3652  ;;  %3664 = vrcp.f32 %v2382_v6  ;;  %v3033_v6 = vld [vmem:[%s4961_s11 + $0x8] sm:$0xff] }
 0x8a6   :  { %v2513_v27 = vpop.xlane.xlu1 %2512  ;;  %v1980_v5 = vmul.f32 %v3653_v1, %v4758_v52  ;;  %3666 = vrcp.f32 %v2518_v60  ;;  %v3655_v49 = vpop.eup %3654 }
 0x8a7   :  { %v2517_v46 = vmax.f32 %v2513_v27, 1e-30  ;;  %v2117_v62 = vmul.f32 %v3655_v49, %v4717_v48 }
 0x8a8   :  { %3413 = vmatprep.mubr.msk.f32.mxu0 %vm153_vm0, %v1980_v5 }
 0x8a9   :  { %3668 = vrcp.f32 %v2517_v46  ;;  %3414 = vmatmul.mubr.msk.f32.vlgmr.msra.gmra.mxu0 %vm153_vm0, %v1982_v10 }
 0x8aa   :  { %v3657_v56 = vpop.eup %3656  ;;  %3424 = vmatpush3.msra.mxu0 %v4673_v21  ;;  %v2648_v41 = vpop.xlane.xlu1 %2647  ;;  %3670 = vrcp.f32 %v2653_v0 }
 0x8ab   :  { %v2652_v63 = vmax.f32 %v2648_v41, 1e-30  ;;  %3425 = vmatprep.subr.mxu0 %v4690_v14  ;;  %v2115_v52 = vmul.f32 %v3657_v56, %v4771_v58  ;;  %v3659_v50 = vpop.eup %3658 }
 0x8ac   :  { %3426 = vmatpush3.msra.mxu0 %v4690_v14  ;;  %v2252_v14 = vmul.f32 %v3659_v50, %v4731_v51 }
 0x8ad   :  { %3672 = vrcp.f32 %v2652_v63  ;;  %3437 = vmatprep.subr.mxu0 %v4694_v44  ;;  %3420 = vmatprep.mubr.msk.f32.mxu1 %vm153_vm0, %v2115_v52 }
 0x8ae   :  { %v3661_v40 = vpop.eup %3660  ;;  %v2783_v21 = vpop.xlane.xlu1 %2782  ;;  %3421 = vmatmul.mubr.msk.f32.vlgmr.msra.gmra.mxu1 %vm153_vm0, %v2117_v62  ;;  %3674 = vrcp.f32 %v2788_v39 }
 0x8af   :  { %v2787_v16 = vmax.f32 %v2783_v21, 1e-30  ;;  %3431 = vmatpush3.msra.mxu1 %v4810_v25  ;;  %v2250_v58 = vmul.f32 %v3661_v40, %v4778_v24  ;;  %v3663_v48 = vpop.eup %3662  ;;  %v3190_v40 = vld [vmem:[%s4960_s10] ss:$0 sm:$0xff] }
 0x8b0   :  { %3432 = vmatprep.subr.mxu1 %v4812_v8  ;;  %v2387_v25 = vmul.f32 %v3663_v48, %v4738_v17 }
 0x8b1   :  { %3676 = vrcp.f32 %v2787_v16  ;;  %3433 = vmatpush3.msra.mxu1 %v4812_v8  ;;  %3427 = vmatprep.mubr.msk.f32.mxu0 %vm153_vm0, %v2250_v58 }
 0x8b2   :  { %v3665_v53 = vpop.eup %3664  ;;  %3444 = vmatprep.subr.mxu1 %v4814_v61  ;;  %3428 = vmatmul.mubr.msk.f32.vlgmr.msra.gmra.mxu0 %vm153_vm0, %v2252_v14 }
 0x8b3   :  { %3438 = vmatpush3.msra.mxu0 %v4694_v44  ;;  %v2385_v24 = vmul.f32 %v3665_v53, %v4784_v12  ;;  %v3667_v51 = vpop.eup %3666 }
 0x8b4   :  { %3439 = vmatprep.subr.mxu0 %v4816_v55  ;;  %v2522_v12 = vmul.f32 %v3667_v51, %v4745_v59 }
 0x8b5   :  { %3440 = vmatpush3.msra.mxu0 %v4816_v55  ;;  %3434 = vmatprep.mubr.msk.f32.mxu1 %vm153_vm0, %v2385_v24  ;;  %v2794_v55 = vpop.permute.xlu1 %2793 }
 0x8b6   :  { %v3669_v8 = vpop.eup %3668  ;;  %3451 = vmatprep.subr.mxu0 %v4818_v15  ;;  %3435 = vmatmul.mubr.msk.f32.vlgmr.msra.gmra.mxu1 %vm153_vm0, %v2387_v25 }
 0x8b7   :  { %3445 = vmatpush3.msra.mxu1 %v4814_v61  ;;  %v2520_v44 = vmul.f32 %v3669_v8, %v4790_v18  ;;  %v3671_v29 = vpop.eup %3670 }
 0x8b8   :  { %3446 = vmatprep.subr.mxu1 %v2659_v22  ;;  %v2657_v18 = vmul.f32 %v3671_v29, %v4752_v28  ;;  %v2958_v29 = vld [vmem:[#allocation5] sm:$0x3] }
 0x8b9   :  { %3447 = vmatpush3.msra.mxu1 %v2659_v22  ;;  %3441 = vmatprep.mubr.msk.f32.mxu0 %vm153_vm0, %v2520_v44 }
 0x8ba   :  { %v3673_v17 = vpop.eup %3672  ;;  %3442 = vmatmul.mubr.msk.f32.vlgmr.msra.gmra.mxu0 %vm153_vm0, %v2522_v12  ;;  %3458 = vmatprep.subr.mxu1 %v3880_v4 }
 0x8bb   :  { %3452 = vmatpush3.msra.mxu0 %v4818_v15  ;;  %v2655_v20 = vmul.f32 %v3673_v17, %v4796_v35  ;;  %v3675_v61 = vpop.eup %3674  ;;  %v3032_v17 = vld [vmem:[%s4961_s11] sm:$0xff] }
 0x8bc   :  { %3453 = vmatprep.subr.mxu0 %v2794_v55  ;;  %v2792_v15 = vmul.f32 %v3675_v61, %v4765_v38 }
 0x8bd   :  { %3454 = vmatpush3.msra.mxu0 %v2794_v55  ;;  %3448 = vmatprep.mubr.msk.f32.mxu1 %vm153_vm0, %v2655_v20 }
 0x8be   :  { %v3677_v59 = vpop.eup %3676  ;;  %3449 = vmatmul.mubr.msk.f32.vlgmr.msra.gmra.mxu1 %vm153_vm0, %v2657_v18  ;;  %3465 = vmatprep.subr.mxu0 %v3880_v4  ;;  %v3192_v18 = vld [vmem:[%s4962_s12] ss:$0 sm:$0xff] }
 0x8bf   :  { %v2790_v23 = vmul.f32 %v3677_v59, %v4802_v2  ;;  %3462 = vmatprep.mubr.msk.f32.mxu1 %vm3881_vm1, %v3880_v4 }
 0x8c1   :  { %3455 = vmatprep.mubr.msk.f32.mxu0 %vm153_vm0, %v2790_v23 }
 0x8c2   :  { %3456 = vmatmul.mubr.msk.f32.vlgmr.msra.gmra.mxu0 %vm153_vm0, %v2792_v15 }
 0x8c3   :  { %3481 = vmatprep.mubr.msk.f32.mxu0 %vm3881_vm1, %v3880_v4  ;;  %3466 = vmatpush3.msra.mxu0 %v3039_v37  ;;  %vm3120_vm1 = vcmask 25600  }
 0x8c4   :  { %3467 = vmatprep.subr.mxu0 %v3880_v4 }
 0x8c5   :  { %3468 = vmatpush3.msra.mxu0 %v3038_v42 }
 0x8c6   :  { %3469 = vmatprep.subr.mxu0 %v3880_v4 }
 0x8c7   :  { %3470 = vmatpush3.msra.mxu0 %v3037_v31 }
 0x8c8   :  { %3471 = vmatprep.subr.mxu0 %v3880_v4 }
 0x8c9   :  { %3472 = vmatpush3.msra.mxu0 %v3036_v57 }
 0x8ca   :  { %3473 = vmatprep.subr.mxu0 %v3880_v4 }
 0x8cb   :  { %3474 = vmatpush3.msra.mxu0 %v3035_v45 }
 0x8cc   :  { %3475 = vmatprep.subr.mxu0 %v3880_v4 }
 0x8cd   :  { %3476 = vmatpush3.msra.mxu0 %v3034_v33 }
 0x8ce   :  { %3477 = vmatprep.subr.mxu0 %v3880_v4 }
 0x8cf   :  { %3478 = vmatpush3.msra.mxu0 %v3033_v6 }
 0x8d0   :  { %3479 = vmatprep.subr.mxu0 %v3880_v4 }
 0x8d1   :  { %3480 = vmatpush3.msra.mxu0 %v3032_v17 }
 0x95a   :  { %v3408_v28 = vpop.f32.mrf.mxu1 }
 0x95c   :  { %v4877_v7 = vpop.f32.mrf.mxu1 }
 0x969   :  { %v3415_v35 = vpop.f32.mrf.mxu0 }
 0x96a   :  { %2884 = vrot.lane.b32.xlu0 %v3415_v35, %s3875_s26 }
 0x96b   :  { %v2061_v36 = vpop.f32.mrf.mxu0 }
 0x96e   :  { %2882 = vrot.lane.b32.xlu0 %v2061_v36, %s3875_s26  ;;  %v3422_v2 = vpop.f32.mrf.mxu1 }
 0x96f   :  { %2892 = vrot.lane.b32.xlu1 %v3422_v2, %s3897_s1 }
 0x970   :  { %v2196_v38 = vpop.f32.mrf.mxu1 }
 0x972   :  { %2890 = vrot.lane.b32.xlu0 %v2196_v38, %s3897_s1  ;;  %v3429_v26 = vpop.f32.mrf.mxu0 }
 0x973   :  { %2900 = vrot.lane.b32.xlu1 %v3429_v26, %s3898_s2 }
 0x974   :  { %v2331_v9 = vpop.f32.mrf.mxu0 }
 0x976   :  { %2898 = vrot.lane.b32.xlu0 %v2331_v9, %s3898_s2  ;;  %v3436_v13 = vpop.f32.mrf.mxu1 }
 0x977   :  { %2908 = vrot.lane.b32.xlu1 %v3436_v13, %s3899_s24 }
 0x978   :  { %v2466_v47 = vpop.f32.mrf.mxu1 }
 0x97a   :  { %2906 = vrot.lane.b32.xlu0 %v2466_v47, %s3899_s24  ;;  %v3443_v30 = vpop.f32.mrf.mxu0 }
 0x97b   :  { %2916 = vrot.lane.b32.xlu1 %v3443_v30, %s3900_s27 }
 0x97c   :  { %v2601_v43 = vpop.f32.mrf.mxu0 }
 0x97e   :  { %2914 = vrot.lane.b32.xlu0 %v2601_v43, %s3900_s27  ;;  %v3450_v54 = vpop.f32.mrf.mxu1  ;;  %s3128_s27 = sshll.u32 %s3903_s8, 4  ;;  %s3129_s27 = int_to_ptr.vmem [resolvable:$true] %s3128_s27 }
 0x97f   :  { %2924 = vrot.lane.b32.xlu1 %v3450_v54, %s3901_s19  ;;  %s3838_s9 = scalar_lea.vmem %s3129_s27, 32  ;;  %p3843_p13 = scmp.lt.s32.totalorder %s3129_s27, %s3129_s27 }
 0x980   :  { %v2736_v32 = vpop.f32.mrf.mxu1  ;;  %p3839_p12 = scmp.ne.s32.totalorder %s3129_s27, %s3838_s9  ;;  %p3844_p0 = scmp.lt.s32.totalorder %s3838_s9, %s3838_s9 }
 0x982   :  { %v3457_v19 = vpop.f32.mrf.mxu0  ;;  %2922 = vrot.lane.b32.xlu0 %v2736_v32, %s3901_s19  ;;  %p3845_p1 = por %p3844_p0, %p3843_p13 }
 0x983   :  { %2932 = vrot.lane.b32.xlu1 %v3457_v19, %s3902_s20 }
 0x984   :  { %v2871_v3 = vpop.f32.mrf.mxu0  ;;  %p3846_p2 = pnand %p3845_p1, %p3839_p12 }
 0x987   :  { %2930 = vrot.lane.b32.xlu1 %v2871_v3, %s3902_s20 }
 0x9dc   :  { %v2885_v34 = vpop.permute.xlu0 %2884 }
 0x9dd   :  { %v2937_v11 = vsel %vm1525_vm9, %v3408_v28, %v2885_v34 }
 0x9e0   :  { %v2883_v60 = vpop.permute.xlu0 %2882 }
 0x9e1   :  { %v2893_v1 = vpop.permute.xlu1 %2892  ;;  %v2936_v62 = vsel %vm1525_vm9, %v4877_v7, %v2883_v60 }
 0x9e2   :  { %v2939_v41 = vsel %vm153_vm0, %v2937_v11, %v2893_v1 }
 0x9e4   :  { %v2891_v27 = vpop.permute.xlu0 %2890 }
 0x9e5   :  { %v2901_v5 = vpop.permute.xlu1 %2900  ;;  %v2938_v21 = vsel %vm153_vm0, %v2936_v62, %v2891_v27 }
 0x9e6   :  { %v2941_v52 = vsel %vm1530_vm10, %v2939_v41, %v2901_v5 }
 0x9e8   :  { %v2899_v46 = vpop.permute.xlu0 %2898 }
 0x9e9   :  { %v2909_v10 = vpop.permute.xlu1 %2908  ;;  %v2940_v14 = vsel %vm1530_vm10, %v2938_v21, %v2899_v46 }
 0x9ea   :  { %v2943_v39 = vsel %vm1533_vm11, %v2941_v52, %v2909_v10 }
 0x9ec   :  { %v2907_v0 = vpop.permute.xlu0 %2906 }
 0x9ed   :  { %v2917_v49 = vpop.permute.xlu1 %2916  ;;  %v2942_v24 = vsel %vm1533_vm11, %v2940_v14, %v2907_v0 }
 0x9ee   :  { %v2945_v50 = vsel %vm1536_vm13, %v2943_v39, %v2917_v49 }
 0x9f0   :  { %v2915_v56 = vpop.permute.xlu0 %2914 }
 0x9f1   :  { %v2925_v63 = vpop.permute.xlu1 %2924  ;;  %v2944_v51 = vsel %vm1536_vm13, %v2942_v24, %v2915_v56 }
 0x9f2   :  { %v2947_v16 = vsel %vm1539_vm14, %v2945_v50, %v2925_v63 }
 0x9f4   :  { %v2923_v48 = vpop.permute.xlu0 %2922 }
 0x9f5   :  { %v2933_v58 = vpop.permute.xlu1 %2932  ;;  %v2946_v8 = vsel %vm1539_vm14, %v2944_v51, %v2923_v48 }
 0x9f6   :  { %v2949_v53 = vsel %vm1542_vm15, %v2947_v16, %v2933_v58 }
 0x9f7   :  { %v2957_v25 = vadd.f32 %v3190_v40, %v2949_v53 }
 0x9f9   :  { %v2931_v22 = vpop.permute.xlu1 %2930  ;;  %3459 = vmatpush3.msra.mxu1 %v2957_v25 }
 0x9fa   :  { %v2948_v44 = vsel %vm1542_vm15, %v2946_v8, %v2931_v22  ;;  %3460 = vmatprep.subr.mxu1 %v3880_v4 }
 0x9fb   :  { %v2956_v12 = vadd.f32 %v3190_v40, %v2948_v44 }
 0x9fd   :  { %3461 = vmatpush3.msra.mxu1 %v2956_v12 }
 0x9fe   :  { %3463 = vmatmul.mubr.msk.f32.vlgmr.msra.gmra.mxu1 %vm153_vm0, %v2958_v29 }
 0xabe   :  { %v3028_v55 = vpop.f32.mrf.mxu1 }
 0xabf   :  { %3482 = vmatmul.mubr.msk.f32.vlgmr.msra.gmra.mxu0 %vm235_vm2, %v3028_v55 }
 0xac0   :  { %v3464_v20 = vpop.f32.mrf.mxu1 }
 0xb7f   :  { %v3116_v4 = vpop.f32.mrf.mxu0 }
 0xb80   :  { %v3117_v61 = vadd.f32 %v3192_v18, %v3116_v4 }
 0xb81   :  { %v3483_v59 = vpop.f32.mrf.mxu0 }
 0xb82   :  { %3121 = vst.msk [vmem:[#allocation16] sm:$0x3] %vm3120_vm1, %v3117_v61 }
 0xb83   :  { %3849 = shalt.err (!%p3846_p2)
}
 0xb84   :  { %3131 = dma.vmem_to_hbm [thread:$0]  %s3129_s27, 32, %s4963_s13, [#allocation4]  }
 0xb85   :  { %3868 = dma.done.wait [#allocation4], 32  }
 0xb86   :  { %3869 = vsyncadd [#allocation4], 4294967264 }
 0xb87   :  { %3135 = vsyncpa [#allocation3], 1 }
 0xb88   :  { %3136 = vsyncpa [#allocation6], 1 }
 0xb89   :  { %3137 = vsyncpa [#allocation9], 1 }
 0xb8a   :  { %3138 = vsyncpa [#allocation12], 1 }
 0xb8b   :  { %3139 = vsyncpa [#allocation15], 1 }
 0xb8c   :  { %3140 = vsyncpa [#allocation4], 1 }

</bundles_post_ra>
